<compile_context>
chip_gen: v6e
topology: v6e:2x2x1
jax: 0.10.0
libtpu: 0.0.40
codegen_flags: <defaults>
</compile_context>

<pallas_src>
import jax
import jax.numpy as jnp
from jax.experimental import pallas as pl
from jax.experimental.pallas import tpu as pltpu

N_SUB = 4  # fixed RK4 substeps per output-time interval


def _ode_decoder_kernel(ts_ref, y0_ref, w1_ref, b1_ref, w2_ref, b2_ref,
                        wo_ref, bo_ref, sol_ref, pred_ref):
  """Whole solve in one invocation; sol_ref/pred_ref are (T*N, D)/(T*N, O)."""
  N, D = y0_ref.shape
  T = ts_ref.shape[0]
  H = w1_ref.shape[1]
  O = pred_ref.shape[1]

  # Hoist loop-invariant weight loads and bias broadcasts out of all loops.
  w1 = w1_ref[...]                                   # (D, H)
  w2 = w2_ref[...]                                   # (H, D)
  b1 = jnp.broadcast_to(b1_ref[...], (N, H))
  b2 = jnp.broadcast_to(b2_ref[...], (N, D))

  def ode_f(y):
    h = jnp.tanh(jnp.dot(y, w1, preferred_element_type=jnp.float32) + b1)
    return jnp.dot(h, w2, preferred_element_type=jnp.float32) + b2

  # sol[0] = initial point (row block 0).
  sol_ref[pl.ds(0, N), :] = y0_ref[...]

  @pl.loop(1, T)
  def _(k):
    dt = (ts_ref[k] - ts_ref[k - 1]) * jnp.float32(1.0 / N_SUB)
    prev = pl.multiple_of((k - 1) * N, N)
    cur = pl.multiple_of(k * N, N)
    y = sol_ref[pl.ds(prev, N), :]
    # Fixed-step RK4, statically unrolled so the scheduler sees the full chain.
    for _ in range(N_SUB):
      k1 = ode_f(y)
      k2 = ode_f(y + (0.5 * dt) * k1)
      k3 = ode_f(y + (0.5 * dt) * k2)
      k4 = ode_f(y + dt * k3)
      y = y + (dt * (1.0 / 6.0)) * (k1 + 2.0 * k2 + 2.0 * k3 + k4)
    sol_ref[pl.ds(cur, N), :] = y

  # output_layer applied once on the full resident slab: (T*N, D) @ (D, O).
  sol_all = sol_ref[...]
  pred = (jnp.dot(sol_all, wo_ref[...], preferred_element_type=jnp.float32)
          + jnp.broadcast_to(bo_ref[...], (T * N, O)))
  pred_ref[...] = pred


def diffeq_solver_decoder(first_point, time_steps, params):
  """first_point: (S, B, D); time_steps: (T,).  Returns (sol_z, pred_x)."""
  w1, b1, w2, b2, wo, bo = params
  S, B, D = first_point.shape
  T = time_steps.shape[0]
  N = S * B
  O = wo.shape[1]

  y0 = first_point.reshape(N, D).astype(jnp.float32)
  ts = time_steps.astype(jnp.float32)

  vmem = pl.BlockSpec(memory_space=pltpu.MemorySpace.VMEM)
  smem = pl.BlockSpec(memory_space=pltpu.MemorySpace.SMEM)

  sol2d, pred2d = pl.pallas_call(
      _ode_decoder_kernel,
      out_shape=(
          jax.ShapeDtypeStruct((T * N, D), jnp.float32),
          jax.ShapeDtypeStruct((T * N, O), jnp.float32),
      ),
      in_specs=[smem, vmem, vmem, vmem, vmem, vmem, vmem, vmem],
      out_specs=(vmem, vmem),
  )(ts, y0, w1.astype(jnp.float32), b1.astype(jnp.float32),
    w2.astype(jnp.float32), b2.astype(jnp.float32),
    wo.astype(jnp.float32), bo.astype(jnp.float32))

  # odeint output is (T, S, B, D); permute(1, 2, 0, 3) -> (S, B, T, D).
  sol_z = sol2d.reshape(T, S, B, D).transpose(1, 2, 0, 3)
  pred_x = pred2d.reshape(T, S, B, O).transpose(1, 2, 0, 3)
  return sol_z, pred_x


def init_params(key, input_dim, output_dim, hidden_dim):
  """Deterministic init; mirrors utils.init_network_weights (normal std=0.1, zero bias)."""
  k1, k2, k3 = jax.random.split(key, 3)
  w1 = 0.1 * jax.random.normal(k1, (input_dim, hidden_dim), jnp.float32)
  b1 = jnp.zeros((1, hidden_dim), jnp.float32)
  w2 = 0.1 * jax.random.normal(k2, (hidden_dim, input_dim), jnp.float32)
  b2 = jnp.zeros((1, input_dim), jnp.float32)
  wo = 0.1 * jax.random.normal(k3, (input_dim, output_dim), jnp.float32)
  bo = jnp.zeros((1, output_dim), jnp.float32)
  return (w1, b1, w2, b2, wo, bo)


if __name__ == "__main__":
  # Small shapes consistent with the latent-ODE decoder forward:
  #   first_point: (n_traj_samples=2, n_traj=4, latent_dim=32)
  #   time_steps_to_predict: (T=8,)
  S, B, D, O, H, T = 2, 4, 32, 16, 64, 8

  key = jax.random.PRNGKey(0)
  k_fp, k_par = jax.random.split(key)
  first_point = jax.random.normal(k_fp, (S, B, D), jnp.float32)
  time_steps = jnp.linspace(0.0, 1.0, T).astype(jnp.float32)
  params = init_params(k_par, D, O, H)

  sol_z, pred_x = jax.jit(diffeq_solver_decoder)(first_point, time_steps, params)
  jax.block_until_ready((sol_z, pred_x))

  assert sol_z.shape == (S, B, T, D), sol_z.shape
  assert pred_x.shape == (S, B, T, O), pred_x.shape
  # Initial time point must equal the initial state.
  assert jnp.allclose(sol_z[:, :, 0, :], first_point, atol=1e-6)
  # Output layer at t=0 must match a plain-JAX Linear on the initial state.
  w1, b1, w2, b2, wo, bo = params
  pred0_ref = first_point.reshape(S * B, D) @ wo + bo
  assert jnp.allclose(pred_x[:, :, 0, :].reshape(S * B, O), pred0_ref,
                      atol=1e-4, rtol=1e-4)

  print("KERNEL_OK")
</pallas_src>

<mosaic_0001>
module attributes {stable_mosaic.version = 11 : i64} {
  func.func @_ode_decoder_kernel(%arg0: memref<8xf32, #tpu.memory_space<smem>>, %arg1: memref<8x32xf32, #tpu.memory_space<vmem>>, %arg2: memref<32x64xf32, #tpu.memory_space<vmem>>, %arg3: memref<1x64xf32, #tpu.memory_space<vmem>>, %arg4: memref<64x32xf32, #tpu.memory_space<vmem>>, %arg5: memref<1x32xf32, #tpu.memory_space<vmem>>, %arg6: memref<32x16xf32, #tpu.memory_space<vmem>>, %arg7: memref<1x16xf32, #tpu.memory_space<vmem>>, %arg8: memref<64x32xf32, #tpu.memory_space<vmem>>, %arg9: memref<64x16xf32, #tpu.memory_space<vmem>>) attributes {dimension_semantics = [], scalar_prefetch = 0 : i64, scratch_operands = 0 : i64, tpu.core_type = #tpu.core_type<tc>} {
    %c0 = arith.constant 0 : index
    %c0_0 = arith.constant 0 : index
    %0 = vector.load %arg2[%c0, %c0_0] : memref<32x64xf32, #tpu.memory_space<vmem>>, vector<32x64xf32>
    %c0_1 = arith.constant 0 : index
    %c0_2 = arith.constant 0 : index
    %1 = vector.load %arg4[%c0_1, %c0_2] : memref<64x32xf32, #tpu.memory_space<vmem>>, vector<64x32xf32>
    %c0_3 = arith.constant 0 : index
    %c0_4 = arith.constant 0 : index
    %2 = vector.load %arg3[%c0_3, %c0_4] : memref<1x64xf32, #tpu.memory_space<vmem>>, vector<1x64xf32>
    %3 = vector.shape_cast %2 : vector<1x64xf32> to vector<1x64xf32>
    %4 = vector.broadcast %3 : vector<1x64xf32> to vector<8x64xf32>
    %c0_5 = arith.constant 0 : index
    %c0_6 = arith.constant 0 : index
    %5 = vector.load %arg5[%c0_5, %c0_6] : memref<1x32xf32, #tpu.memory_space<vmem>>, vector<1x32xf32>
    %6 = vector.shape_cast %5 : vector<1x32xf32> to vector<1x32xf32>
    %7 = vector.broadcast %6 : vector<1x32xf32> to vector<8x32xf32>
    %c0_7 = arith.constant 0 : index
    %c0_8 = arith.constant 0 : index
    %8 = vector.load %arg1[%c0_7, %c0_8] : memref<8x32xf32, #tpu.memory_space<vmem>>, vector<8x32xf32>
    %c0_9 = arith.constant 0 : index
    %c0_10 = arith.constant 0 : index
    %9 = vector.load %arg8[%c0_9, %c0_10] : memref<64x32xf32, #tpu.memory_space<vmem>>, vector<8x32xf32>
    tpu.vector_store %arg8[%c0_9, %c0_10], %8 {strides = array<i32>} : memref<64x32xf32, #tpu.memory_space<vmem>>, vector<8x32xf32>,
    %c0_i32 = arith.constant 0 : i32
    %c7_i32 = arith.constant 7 : i32
    %10 = arith.addi %c0_i32, %c7_i32 : i32
    %c1_i32 = arith.constant 1 : i32
    scf.for %arg10 = %c0_i32 to %10 step %c1_i32  : i32 {
      %c1_i32_20 = arith.constant 1 : i32
      %19 = arith.muli %arg10, %c1_i32_20 : i32
      %c1_i32_21 = arith.constant 1 : i32
      %20 = arith.addi %c1_i32_21, %19 : i32
      %21 = arith.index_cast %20 : i32 to index
      %22 = memref.load %arg0[%21] : memref<8xf32, #tpu.memory_space<smem>>
      %c1_i32_22 = arith.constant 1 : i32
      %23 = arith.subi %20, %c1_i32_22 : i32
      %24 = arith.index_cast %23 : i32 to index
      %25 = memref.load %arg0[%24] : memref<8xf32, #tpu.memory_space<smem>>
      %26 = arith.subf %22, %25 : f32
      %cst_23 = arith.constant 2.500000e-01 : f32
      %27 = arith.mulf %26, %cst_23 : f32
      %c1_i32_24 = arith.constant 1 : i32
      %28 = arith.subi %20, %c1_i32_24 : i32
      %c8_i32 = arith.constant 8 : i32
      %29 = arith.muli %28, %c8_i32 : i32
      %30 = tpu.assume_multiple %29, 8 : i32
      %c8_i32_25 = arith.constant 8 : i32
      %31 = arith.muli %20, %c8_i32_25 : i32
      %32 = tpu.assume_multiple %31, 8 : i32
      %33 = arith.index_cast %30 : i32 to index
      %c0_26 = arith.constant 0 : index
      %34 = vector.load %arg8[%33, %c0_26] : memref<64x32xf32, #tpu.memory_space<vmem>>, vector<8x32xf32>
      %cst_27 = arith.constant dense<0.000000e+00> : vector<8x64xf32>
      %35 = tpu.matmul %34, %0, %cst_27 {dimension_numbers = #tpu.dot_dimension_numbers<[1], [0], [0], [1], [0, 0, 1, 1], [], []>} : vector<8x32xf32>, vector<32x64xf32>, vector<8x64xf32> -> vector<8x64xf32>
      %36 = arith.addf %35, %4 : vector<8x64xf32>
      %37 = math.tanh %36 : vector<8x64xf32>
      %cst_28 = arith.constant dense<0.000000e+00> : vector<8x32xf32>
      %38 = tpu.matmul %37, %1, %cst_28 {dimension_numbers = #tpu.dot_dimension_numbers<[1], [0], [0], [1], [0, 0, 1, 1], [], []>} : vector<8x64xf32>, vector<64x32xf32>, vector<8x32xf32> -> vector<8x32xf32>
      %39 = arith.addf %38, %7 : vector<8x32xf32>
      %cst_29 = arith.constant 5.000000e-01 : f32
      %40 = arith.mulf %cst_29, %27 : f32
      %41 = vector.broadcast %40 : f32 to vector<8x32xf32>
      %42 = arith.mulf %41, %39 : vector<8x32xf32>
      %43 = arith.addf %34, %42 : vector<8x32xf32>
      %cst_30 = arith.constant dense<0.000000e+00> : vector<8x64xf32>
      %44 = tpu.matmul %43, %0, %cst_30 {dimension_numbers = #tpu.dot_dimension_numbers<[1], [0], [0], [1], [0, 0, 1, 1], [], []>} : vector<8x32xf32>, vector<32x64xf32>, vector<8x64xf32> -> vector<8x64xf32>
      %45 = arith.addf %44, %4 : vector<8x64xf32>
      %46 = math.tanh %45 : vector<8x64xf32>
      %cst_31 = arith.constant dense<0.000000e+00> : vector<8x32xf32>
      %47 = tpu.matmul %46, %1, %cst_31 {dimension_numbers = #tpu.dot_dimension_numbers<[1], [0], [0], [1], [0, 0, 1, 1], [], []>} : vector<8x64xf32>, vector<64x32xf32>, vector<8x32xf32> -> vector<8x32xf32>
      %48 = arith.addf %47, %7 : vector<8x32xf32>
      %cst_32 = arith.constant 5.000000e-01 : f32
      %49 = arith.mulf %cst_32, %27 : f32
      %50 = vector.broadcast %49 : f32 to vector<8x32xf32>
      %51 = arith.mulf %50, %48 : vector<8x32xf32>
      %52 = arith.addf %34, %51 : vector<8x32xf32>
      %cst_33 = arith.constant dense<0.000000e+00> : vector<8x64xf32>
      %53 = tpu.matmul %52, %0, %cst_33 {dimension_numbers = #tpu.dot_dimension_numbers<[1], [0], [0], [1], [0, 0, 1, 1], [], []>} : vector<8x32xf32>, vector<32x64xf32>, vector<8x64xf32> -> vector<8x64xf32>
      %54 = arith.addf %53, %4 : vector<8x64xf32>
      %55 = math.tanh %54 : vector<8x64xf32>
      %cst_34 = arith.constant dense<0.000000e+00> : vector<8x32xf32>
      %56 = tpu.matmul %55, %1, %cst_34 {dimension_numbers = #tpu.dot_dimension_numbers<[1], [0], [0], [1], [0, 0, 1, 1], [], []>} : vector<8x64xf32>, vector<64x32xf32>, vector<8x32xf32> -> vector<8x32xf32>
      %57 = arith.addf %56, %7 : vector<8x32xf32>
      %58 = vector.broadcast %27 : f32 to vector<8x32xf32>
      %59 = arith.mulf %58, %57 : vector<8x32xf32>
      %60 = arith.addf %34, %59 : vector<8x32xf32>
      %cst_35 = arith.constant dense<0.000000e+00> : vector<8x64xf32>
      %61 = tpu.matmul %60, %0, %cst_35 {dimension_numbers = #tpu.dot_dimension_numbers<[1], [0], [0], [1], [0, 0, 1, 1], [], []>} : vector<8x32xf32>, vector<32x64xf32>, vector<8x64xf32> -> vector<8x64xf32>
      %62 = arith.addf %61, %4 : vector<8x64xf32>
      %63 = math.tanh %62 : vector<8x64xf32>
      %cst_36 = arith.constant dense<0.000000e+00> : vector<8x32xf32>
      %64 = tpu.matmul %63, %1, %cst_36 {dimension_numbers = #tpu.dot_dimension_numbers<[1], [0], [0], [1], [0, 0, 1, 1], [], []>} : vector<8x64xf32>, vector<64x32xf32>, vector<8x32xf32> -> vector<8x32xf32>
      %65 = arith.addf %64, %7 : vector<8x32xf32>
      %cst_37 = arith.constant 0.166666672 : f32
      %66 = arith.mulf %27, %cst_37 : f32
      %cst_38 = arith.constant 2.000000e+00 : f32
      %67 = vector.broadcast %cst_38 : f32 to vector<8x32xf32>
      %68 = arith.mulf %67, %48 : vector<8x32xf32>
      %69 = arith.addf %39, %68 : vector<8x32xf32>
      %cst_39 = arith.constant 2.000000e+00 : f32
      %70 = vector.broadcast %cst_39 : f32 to vector<8x32xf32>
      %71 = arith.mulf %70, %57 : vector<8x32xf32>
      %72 = arith.addf %69, %71 : vector<8x32xf32>
      %73 = arith.addf %72, %65 : vector<8x32xf32>
      %74 = vector.broadcast %66 : f32 to vector<8x32xf32>
      %75 = arith.mulf %74, %73 : vector<8x32xf32>
      %76 = arith.addf %34, %75 : vector<8x32xf32>
      %cst_40 = arith.constant dense<0.000000e+00> : vector<8x64xf32>
      %77 = tpu.matmul %76, %0, %cst_40 {dimension_numbers = #tpu.dot_dimension_numbers<[1], [0], [0], [1], [0, 0, 1, 1], [], []>} : vector<8x32xf32>, vector<32x64xf32>, vector<8x64xf32> -> vector<8x64xf32>
      %78 = arith.addf %77, %4 : vector<8x64xf32>
      %79 = math.tanh %78 : vector<8x64xf32>
      %cst_41 = arith.constant dense<0.000000e+00> : vector<8x32xf32>
      %80 = tpu.matmul %79, %1, %cst_41 {dimension_numbers = #tpu.dot_dimension_numbers<[1], [0], [0], [1], [0, 0, 1, 1], [], []>} : vector<8x64xf32>, vector<64x32xf32>, vector<8x32xf32> -> vector<8x32xf32>
      %81 = arith.addf %80, %7 : vector<8x32xf32>
      %cst_42 = arith.constant 5.000000e-01 : f32
      %82 = arith.mulf %cst_42, %27 : f32
      %83 = vector.broadcast %82 : f32 to vector<8x32xf32>
      %84 = arith.mulf %83, %81 : vector<8x32xf32>
      %85 = arith.addf %76, %84 : vector<8x32xf32>
      %cst_43 = arith.constant dense<0.000000e+00> : vector<8x64xf32>
      %86 = tpu.matmul %85, %0, %cst_43 {dimension_numbers = #tpu.dot_dimension_numbers<[1], [0], [0], [1], [0, 0, 1, 1], [], []>} : vector<8x32xf32>, vector<32x64xf32>, vector<8x64xf32> -> vector<8x64xf32>
      %87 = arith.addf %86, %4 : vector<8x64xf32>
      %88 = math.tanh %87 : vector<8x64xf32>
      %cst_44 = arith.constant dense<0.000000e+00> : vector<8x32xf32>
      %89 = tpu.matmul %88, %1, %cst_44 {dimension_numbers = #tpu.dot_dimension_numbers<[1], [0], [0], [1], [0, 0, 1, 1], [], []>} : vector<8x64xf32>, vector<64x32xf32>, vector<8x32xf32> -> vector<8x32xf32>
      %90 = arith.addf %89, %7 : vector<8x32xf32>
      %cst_45 = arith.constant 5.000000e-01 : f32
      %91 = arith.mulf %cst_45, %27 : f32
      %92 = vector.broadcast %91 : f32 to vector<8x32xf32>
      %93 = arith.mulf %92, %90 : vector<8x32xf32>
      %94 = arith.addf %76, %93 : vector<8x32xf32>
      %cst_46 = arith.constant dense<0.000000e+00> : vector<8x64xf32>
      %95 = tpu.matmul %94, %0, %cst_46 {dimension_numbers = #tpu.dot_dimension_numbers<[1], [0], [0], [1], [0, 0, 1, 1], [], []>} : vector<8x32xf32>, vector<32x64xf32>, vector<8x64xf32> -> vector<8x64xf32>
      %96 = arith.addf %95, %4 : vector<8x64xf32>
      %97 = math.tanh %96 : vector<8x64xf32>
      %cst_47 = arith.constant dense<0.000000e+00> : vector<8x32xf32>
      %98 = tpu.matmul %97, %1, %cst_47 {dimension_numbers = #tpu.dot_dimension_numbers<[1], [0], [0], [1], [0, 0, 1, 1], [], []>} : vector<8x64xf32>, vector<64x32xf32>, vector<8x32xf32> -> vector<8x32xf32>
      %99 = arith.addf %98, %7 : vector<8x32xf32>
      %100 = vector.broadcast %27 : f32 to vector<8x32xf32>
      %101 = arith.mulf %100, %99 : vector<8x32xf32>
      %102 = arith.addf %76, %101 : vector<8x32xf32>
      %cst_48 = arith.constant dense<0.000000e+00> : vector<8x64xf32>
      %103 = tpu.matmul %102, %0, %cst_48 {dimension_numbers = #tpu.dot_dimension_numbers<[1], [0], [0], [1], [0, 0, 1, 1], [], []>} : vector<8x32xf32>, vector<32x64xf32>, vector<8x64xf32> -> vector<8x64xf32>
      %104 = arith.addf %103, %4 : vector<8x64xf32>
      %105 = math.tanh %104 : vector<8x64xf32>
      %cst_49 = arith.constant dense<0.000000e+00> : vector<8x32xf32>
      %106 = tpu.matmul %105, %1, %cst_49 {dimension_numbers = #tpu.dot_dimension_numbers<[1], [0], [0], [1], [0, 0, 1, 1], [], []>} : vector<8x64xf32>, vector<64x32xf32>, vector<8x32xf32> -> vector<8x32xf32>
      %107 = arith.addf %106, %7 : vector<8x32xf32>
      %cst_50 = arith.constant 0.166666672 : f32
      %108 = arith.mulf %27, %cst_50 : f32
      %cst_51 = arith.constant 2.000000e+00 : f32
      %109 = vector.broadcast %cst_51 : f32 to vector<8x32xf32>
      %110 = arith.mulf %109, %90 : vector<8x32xf32>
      %111 = arith.addf %81, %110 : vector<8x32xf32>
      %cst_52 = arith.constant 2.000000e+00 : f32
      %112 = vector.broadcast %cst_52 : f32 to vector<8x32xf32>
      %113 = arith.mulf %112, %99 : vector<8x32xf32>
      %114 = arith.addf %111, %113 : vector<8x32xf32>
      %115 = arith.addf %114, %107 : vector<8x32xf32>
      %116 = vector.broadcast %108 : f32 to vector<8x32xf32>
      %117 = arith.mulf %116, %115 : vector<8x32xf32>
      %118 = arith.addf %76, %117 : vector<8x32xf32>
      %cst_53 = arith.constant dense<0.000000e+00> : vector<8x64xf32>
      %119 = tpu.matmul %118, %0, %cst_53 {dimension_numbers = #tpu.dot_dimension_numbers<[1], [0], [0], [1], [0, 0, 1, 1], [], []>} : vector<8x32xf32>, vector<32x64xf32>, vector<8x64xf32> -> vector<8x64xf32>
      %120 = arith.addf %119, %4 : vector<8x64xf32>
      %121 = math.tanh %120 : vector<8x64xf32>
      %cst_54 = arith.constant dense<0.000000e+00> : vector<8x32xf32>
      %122 = tpu.matmul %121, %1, %cst_54 {dimension_numbers = #tpu.dot_dimension_numbers<[1], [0], [0], [1], [0, 0, 1, 1], [], []>} : vector<8x64xf32>, vector<64x32xf32>, vector<8x32xf32> -> vector<8x32xf32>
      %123 = arith.addf %122, %7 : vector<8x32xf32>
      %cst_55 = arith.constant 5.000000e-01 : f32
      %124 = arith.mulf %cst_55, %27 : f32
      %125 = vector.broadcast %124 : f32 to vector<8x32xf32>
      %126 = arith.mulf %125, %123 : vector<8x32xf32>
      %127 = arith.addf %118, %126 : vector<8x32xf32>
      %cst_56 = arith.constant dense<0.000000e+00> : vector<8x64xf32>
      %128 = tpu.matmul %127, %0, %cst_56 {dimension_numbers = #tpu.dot_dimension_numbers<[1], [0], [0], [1], [0, 0, 1, 1], [], []>} : vector<8x32xf32>, vector<32x64xf32>, vector<8x64xf32> -> vector<8x64xf32>
      %129 = arith.addf %128, %4 : vector<8x64xf32>
      %130 = math.tanh %129 : vector<8x64xf32>
      %cst_57 = arith.constant dense<0.000000e+00> : vector<8x32xf32>
      %131 = tpu.matmul %130, %1, %cst_57 {dimension_numbers = #tpu.dot_dimension_numbers<[1], [0], [0], [1], [0, 0, 1, 1], [], []>} : vector<8x64xf32>, vector<64x32xf32>, vector<8x32xf32> -> vector<8x32xf32>
      %132 = arith.addf %131, %7 : vector<8x32xf32>
      %cst_58 = arith.constant 5.000000e-01 : f32
      %133 = arith.mulf %cst_58, %27 : f32
      %134 = vector.broadcast %133 : f32 to vector<8x32xf32>
      %135 = arith.mulf %134, %132 : vector<8x32xf32>
      %136 = arith.addf %118, %135 : vector<8x32xf32>
      %cst_59 = arith.constant dense<0.000000e+00> : vector<8x64xf32>
      %137 = tpu.matmul %136, %0, %cst_59 {dimension_numbers = #tpu.dot_dimension_numbers<[1], [0], [0], [1], [0, 0, 1, 1], [], []>} : vector<8x32xf32>, vector<32x64xf32>, vector<8x64xf32> -> vector<8x64xf32>
      %138 = arith.addf %137, %4 : vector<8x64xf32>
      %139 = math.tanh %138 : vector<8x64xf32>
      %cst_60 = arith.constant dense<0.000000e+00> : vector<8x32xf32>
      %140 = tpu.matmul %139, %1, %cst_60 {dimension_numbers = #tpu.dot_dimension_numbers<[1], [0], [0], [1], [0, 0, 1, 1], [], []>} : vector<8x64xf32>, vector<64x32xf32>, vector<8x32xf32> -> vector<8x32xf32>
      %141 = arith.addf %140, %7 : vector<8x32xf32>
      %142 = vector.broadcast %27 : f32 to vector<8x32xf32>
      %143 = arith.mulf %142, %141 : vector<8x32xf32>
      %144 = arith.addf %118, %143 : vector<8x32xf32>
      %cst_61 = arith.constant dense<0.000000e+00> : vector<8x64xf32>
      %145 = tpu.matmul %144, %0, %cst_61 {dimension_numbers = #tpu.dot_dimension_numbers<[1], [0], [0], [1], [0, 0, 1, 1], [], []>} : vector<8x32xf32>, vector<32x64xf32>, vector<8x64xf32> -> vector<8x64xf32>
      %146 = arith.addf %145, %4 : vector<8x64xf32>
      %147 = math.tanh %146 : vector<8x64xf32>
      %cst_62 = arith.constant dense<0.000000e+00> : vector<8x32xf32>
      %148 = tpu.matmul %147, %1, %cst_62 {dimension_numbers = #tpu.dot_dimension_numbers<[1], [0], [0], [1], [0, 0, 1, 1], [], []>} : vector<8x64xf32>, vector<64x32xf32>, vector<8x32xf32> -> vector<8x32xf32>
      %149 = arith.addf %148, %7 : vector<8x32xf32>
      %cst_63 = arith.constant 0.166666672 : f32
      %150 = arith.mulf %27, %cst_63 : f32
      %cst_64 = arith.constant 2.000000e+00 : f32
      %151 = vector.broadcast %cst_64 : f32 to vector<8x32xf32>
      %152 = arith.mulf %151, %132 : vector<8x32xf32>
      %153 = arith.addf %123, %152 : vector<8x32xf32>
      %cst_65 = arith.constant 2.000000e+00 : f32
      %154 = vector.broadcast %cst_65 : f32 to vector<8x32xf32>
      %155 = arith.mulf %154, %141 : vector<8x32xf32>
      %156 = arith.addf %153, %155 : vector<8x32xf32>
      %157 = arith.addf %156, %149 : vector<8x32xf32>
      %158 = vector.broadcast %150 : f32 to vector<8x32xf32>
      %159 = arith.mulf %158, %157 : vector<8x32xf32>
      %160 = arith.addf %118, %159 : vector<8x32xf32>
      %cst_66 = arith.constant dense<0.000000e+00> : vector<8x64xf32>
      %161 = tpu.matmul %160, %0, %cst_66 {dimension_numbers = #tpu.dot_dimension_numbers<[1], [0], [0], [1], [0, 0, 1, 1], [], []>} : vector<8x32xf32>, vector<32x64xf32>, vector<8x64xf32> -> vector<8x64xf32>
      %162 = arith.addf %161, %4 : vector<8x64xf32>
      %163 = math.tanh %162 : vector<8x64xf32>
      %cst_67 = arith.constant dense<0.000000e+00> : vector<8x32xf32>
      %164 = tpu.matmul %163, %1, %cst_67 {dimension_numbers = #tpu.dot_dimension_numbers<[1], [0], [0], [1], [0, 0, 1, 1], [], []>} : vector<8x64xf32>, vector<64x32xf32>, vector<8x32xf32> -> vector<8x32xf32>
      %165 = arith.addf %164, %7 : vector<8x32xf32>
      %cst_68 = arith.constant 5.000000e-01 : f32
      %166 = arith.mulf %cst_68, %27 : f32
      %167 = vector.broadcast %166 : f32 to vector<8x32xf32>
      %168 = arith.mulf %167, %165 : vector<8x32xf32>
      %169 = arith.addf %160, %168 : vector<8x32xf32>
      %cst_69 = arith.constant dense<0.000000e+00> : vector<8x64xf32>
      %170 = tpu.matmul %169, %0, %cst_69 {dimension_numbers = #tpu.dot_dimension_numbers<[1], [0], [0], [1], [0, 0, 1, 1], [], []>} : vector<8x32xf32>, vector<32x64xf32>, vector<8x64xf32> -> vector<8x64xf32>
      %171 = arith.addf %170, %4 : vector<8x64xf32>
      %172 = math.tanh %171 : vector<8x64xf32>
      %cst_70 = arith.constant dense<0.000000e+00> : vector<8x32xf32>
      %173 = tpu.matmul %172, %1, %cst_70 {dimension_numbers = #tpu.dot_dimension_numbers<[1], [0], [0], [1], [0, 0, 1, 1], [], []>} : vector<8x64xf32>, vector<64x32xf32>, vector<8x32xf32> -> vector<8x32xf32>
      %174 = arith.addf %173, %7 : vector<8x32xf32>
      %cst_71 = arith.constant 5.000000e-01 : f32
      %175 = arith.mulf %cst_71, %27 : f32
      %176 = vector.broadcast %175 : f32 to vector<8x32xf32>
      %177 = arith.mulf %176, %174 : vector<8x32xf32>
      %178 = arith.addf %160, %177 : vector<8x32xf32>
      %cst_72 = arith.constant dense<0.000000e+00> : vector<8x64xf32>
      %179 = tpu.matmul %178, %0, %cst_72 {dimension_numbers = #tpu.dot_dimension_numbers<[1], [0], [0], [1], [0, 0, 1, 1], [], []>} : vector<8x32xf32>, vector<32x64xf32>, vector<8x64xf32> -> vector<8x64xf32>
      %180 = arith.addf %179, %4 : vector<8x64xf32>
      %181 = math.tanh %180 : vector<8x64xf32>
      %cst_73 = arith.constant dense<0.000000e+00> : vector<8x32xf32>
      %182 = tpu.matmul %181, %1, %cst_73 {dimension_numbers = #tpu.dot_dimension_numbers<[1], [0], [0], [1], [0, 0, 1, 1], [], []>} : vector<8x64xf32>, vector<64x32xf32>, vector<8x32xf32> -> vector<8x32xf32>
      %183 = arith.addf %182, %7 : vector<8x32xf32>
      %184 = vector.broadcast %27 : f32 to vector<8x32xf32>
      %185 = arith.mulf %184, %183 : vector<8x32xf32>
      %186 = arith.addf %160, %185 : vector<8x32xf32>
      %cst_74 = arith.constant dense<0.000000e+00> : vector<8x64xf32>
      %187 = tpu.matmul %186, %0, %cst_74 {dimension_numbers = #tpu.dot_dimension_numbers<[1], [0], [0], [1], [0, 0, 1, 1], [], []>} : vector<8x32xf32>, vector<32x64xf32>, vector<8x64xf32> -> vector<8x64xf32>
      %188 = arith.addf %187, %4 : vector<8x64xf32>
      %189 = math.tanh %188 : vector<8x64xf32>
      %cst_75 = arith.constant dense<0.000000e+00> : vector<8x32xf32>
      %190 = tpu.matmul %189, %1, %cst_75 {dimension_numbers = #tpu.dot_dimension_numbers<[1], [0], [0], [1], [0, 0, 1, 1], [], []>} : vector<8x64xf32>, vector<64x32xf32>, vector<8x32xf32> -> vector<8x32xf32>
      %191 = arith.addf %190, %7 : vector<8x32xf32>
      %cst_76 = arith.constant 0.166666672 : f32
      %192 = arith.mulf %27, %cst_76 : f32
      %cst_77 = arith.constant 2.000000e+00 : f32
      %193 = vector.broadcast %cst_77 : f32 to vector<8x32xf32>
      %194 = arith.mulf %193, %174 : vector<8x32xf32>
      %195 = arith.addf %165, %194 : vector<8x32xf32>
      %cst_78 = arith.constant 2.000000e+00 : f32
      %196 = vector.broadcast %cst_78 : f32 to vector<8x32xf32>
      %197 = arith.mulf %196, %183 : vector<8x32xf32>
      %198 = arith.addf %195, %197 : vector<8x32xf32>
      %199 = arith.addf %198, %191 : vector<8x32xf32>
      %200 = vector.broadcast %192 : f32 to vector<8x32xf32>
      %201 = arith.mulf %200, %199 : vector<8x32xf32>
      %202 = arith.addf %160, %201 : vector<8x32xf32>
      %203 = arith.index_cast %32 : i32 to index
      %c0_79 = arith.constant 0 : index
      %204 = vector.load %arg8[%203, %c0_79] : memref<64x32xf32, #tpu.memory_space<vmem>>, vector<8x32xf32>
      tpu.vector_store %arg8[%203, %c0_79], %202 {strides = array<i32>} : memref<64x32xf32, #tpu.memory_space<vmem>>, vector<8x32xf32>,
    }
    %c7_i32_11 = arith.constant 7 : i32
    %c0_12 = arith.constant 0 : index
    %c0_13 = arith.constant 0 : index
    %11 = vector.load %arg8[%c0_12, %c0_13] : memref<64x32xf32, #tpu.memory_space<vmem>>, vector<64x32xf32>
    %c0_14 = arith.constant 0 : index
    %c0_15 = arith.constant 0 : index
    %12 = vector.load %arg6[%c0_14, %c0_15] : memref<32x16xf32, #tpu.memory_space<vmem>>, vector<32x16xf32>
    %cst = arith.constant dense<0.000000e+00> : vector<64x16xf32>
    %13 = tpu.matmul %11, %12, %cst {dimension_numbers = #tpu.dot_dimension_numbers<[1], [0], [0], [1], [0, 0, 1, 1], [], []>} : vector<64x32xf32>, vector<32x16xf32>, vector<64x16xf32> -> vector<64x16xf32>
    %c0_16 = arith.constant 0 : index
    %c0_17 = arith.constant 0 : index
    %14 = vector.load %arg7[%c0_16, %c0_17] : memref<1x16xf32, #tpu.memory_space<vmem>>, vector<1x16xf32>
    %15 = vector.shape_cast %14 : vector<1x16xf32> to vector<1x16xf32>
    %16 = vector.broadcast %15 : vector<1x16xf32> to vector<64x16xf32>
    %17 = arith.addf %13, %16 : vector<64x16xf32>
    %c0_18 = arith.constant 0 : index
    %c0_19 = arith.constant 0 : index
    %18 = vector.load %arg9[%c0_18, %c0_19] : memref<64x16xf32, #tpu.memory_space<vmem>>, vector<64x16xf32>
    tpu.vector_store %arg9[%c0_18, %c0_19], %17 {strides = array<i32>} : memref<64x16xf32, #tpu.memory_space<vmem>>, vector<64x16xf32>,
    return
  }
}

</mosaic_0001>

<bundles_post_ra>
// kernel: diffeq_solver_decoder.1
= control target key start
LH: loop header
LB: loop body
LE: loop exit
PB: predicated region body
PF: predicated region fallthrough
CT: control target
= control target key end

     0   :  { %15 = vsyncpa [#allocation3], 0  ;;  %s4349_s0 = inlined_call_operand.vmem [shape: f32[8], index: 0, kind: input, shape index: {}]   ;;  %s4350_s1 = inlined_call_operand.vmem [shape: f32[8,32], index: 1, kind: input, shape index: {}]   ;;  %s4351_s2 = inlined_call_operand.vmem [shape: f32[32,64], index: 2, kind: input, shape index: {}]   ;;  %s4352_s3 = inlined_call_operand.vmem [shape: f32[1,64], index: 3, kind: input, shape index: {}]   ;;  %s4353_s4 = inlined_call_operand.vmem [shape: f32[64,32], index: 4, kind: input, shape index: {}]   ;;  %s4354_s5 = inlined_call_operand.vmem [shape: f32[1,32], index: 5, kind: input, shape index: {}]   ;;  %s4355_s6 = inlined_call_operand.vmem [shape: f32[32,16], index: 6, kind: input, shape index: {}]   ;;  %s4356_s7 = inlined_call_operand.vmem [shape: f32[1,16], index: 7, kind: input, shape index: {}]   ;;  %s4357_s8 = inlined_call_operand.vmem [shape: f32[64,32], index: 8, kind: output, shape index: {0}]   ;;  %s4358_s9 = inlined_call_operand.vmem [shape: f32[64,16], index: 9, kind: output, shape index: {1}]  }
   0x1   :  { %s22_s11 = sshll.u32 %s4349_s0, 4  ;;  %s23_s11 = int_to_ptr.vmem [resolvable:$true] %s22_s11 }
   0x2   :  { %s3509_s12 = scalar_lea.vmem %s23_s11, 16  ;;  %p3514_p1 = scmp.lt.s32.totalorder %s23_s11, %s23_s11 }
   0x3   :  { %p3510_p0 = scmp.ne.s32.totalorder %s23_s11, %s3509_s12  ;;  %p3515_p2 = scmp.lt.s32.totalorder %s3509_s12, %s3509_s12 }
   0x5   :  { %p3516_p3 = por %p3515_p2, %p3514_p1 }
   0x7   :  { %p3517_p4 = pnand %p3516_p3, %p3510_p0 }
   0x9   :  { %3520 = shalt.err (!%p3517_p4)
}
   0xa   :  { %s3531_s13 = smov [#allocation2]  }
   0xb   :  { %25 = dma.vmem_to_smem %s23_s11, 16, %s3531_s13, [#allocation3]  }
   0xc   :  { %3525 = dma.done.wait [#allocation3], 16  }
   0xd   :  { %3526 = vsyncadd [#allocation3], 4294967280 }
   0xe   :  { %43 = sfence }
   0xf   :  { %v3590_v0 = vld [vmem:[%s4351_s2] sm:$0xff]  ;;  %v3595_v1 = vld [vmem:[%s4351_s2 + $0x8] sm:$0xff]  ;;  %v3600_v2 = vld [vmem:[%s4351_s2 + $0x10] sm:$0xff]  ;;  %vm71_vm0 = vcmask 261120  }
  0x10   :  { %v3605_v3 = vld [vmem:[%s4351_s2 + $0x18] sm:$0xff]  ;;  %v3610_v4 = vld [vmem:[%s4353_s4] sm:$0xff]  ;;  %v3615_v5 = vld [vmem:[%s4353_s4 + $0x8] sm:$0xff] }
  0x11   :  { %v3620_v6 = vld [vmem:[%s4353_s4 + $0x10] sm:$0xff]  ;;  %v3625_v7 = vld [vmem:[%s4353_s4 + $0x18] sm:$0xff]  ;;  %v3630_v8 = vld [vmem:[%s4353_s4 + $0x20] sm:$0xff] }
  0x12   :  { %v3635_v9 = vld [vmem:[%s4353_s4 + $0x28] sm:$0xff]  ;;  %v3640_v10 = vld [vmem:[%s4353_s4 + $0x30] sm:$0xff]  ;;  %v3645_v11 = vld [vmem:[%s4353_s4 + $0x38] sm:$0xff]  ;;  %s3664_s4 = smov 0  }
  0x13   :  { %v3650_v12 = vld [vmem:[%s4352_s3] ss:$0 sm:$0xff] }
  0x14   :  { %v3655_v13 = vld [vmem:[%s4354_s5] ss:$0 sm:$0xff] }
  0x15   :  { %v70_v14 = vld [vmem:[%s4350_s1] sm:$0xff] }
  0x16   :  { %72 = vst.msk [vmem:[%s4357_s8] sm:$0xff] %vm71_vm0, %v70_v14 }
  0x17 LB: > { %v3532_v15 = vmov 0.0   ;;  %vm3533_vm1 = vmmov 0   ;;  %s2678_s1 = sshll.u32 %s3529_s4, 3  ;;  %vm162_vm2 = vcmask 523264   ;;  %s3733_s23 = sadd.s32 1, %s3529_s4   ;;  %s3529_s4 = sphi %s3664_s4, %s4359_s4  }
  0x18   : > { %2958 = vmatprep.subr.mxu1 %v3532_v15  ;;  %2966 = vmatprep.mubr.msk.f32.mxu1 %vm3533_vm1, %v3532_v15  ;;  %s3681_s22 = scalar_lea.vmem %s4357_s8, %s2678_s1  ;;  %s81_s24 = sld [smem:[#allocation2 + %s3529_s4]] }
  0x19   : > { %2959 = vmatpush3.msra.mxu1 %v3605_v3  ;;  %2988 = vmatprep.subr.mxu0 %v3532_v15  ;;  %s80_s25 = sld [smem:[#allocation2 + %s3733_s23]]  ;;  %p75_p5 = scmp.ge.s32.totalorder %s3733_s23, 7  }
  0x1a   : > { %2960 = vmatprep.subr.mxu1 %v3532_v15  ;;  %2989 = vmatpush3.msra.mxu0 %v3605_v3  ;;  %s4359_s4 = smov %s3733_s23  ;;  %vm2648_vm3 = vcmask (%p75_p5), 130048  }
  0x1b   : > { %2961 = vmatpush3.msra.mxu1 %v3600_v2  ;;  %2990 = vmatprep.subr.mxu0 %v3532_v15 }
  0x1c   : > { %2962 = vmatprep.subr.mxu1 %v3532_v15  ;;  %2991 = vmatpush3.msra.mxu0 %v3600_v2 }
  0x1d   : > { %2963 = vmatpush3.msra.mxu1 %v3595_v1  ;;  %v3688_v16 = vld [vmem:[%s3681_s22] sm:$0xff]  ;;  %2992 = vmatprep.subr.mxu0 %v3532_v15 }
  0x1e   : > { %2964 = vmatprep.subr.mxu1 %v3532_v15  ;;  %2993 = vmatpush3.msra.mxu0 %v3595_v1 }
  0x1f   : > { %2965 = vmatpush3.msra.mxu1 %v3590_v0  ;;  %2994 = vmatprep.subr.mxu0 %v3532_v15  ;;  %s82_s26 = ssub.f32 %s80_s25, %s81_s24 }
  0x20   : > { %2967 = vmatmul.mubr.msk.f32.vlgmr.msra.gmra.mxu1 %vm71_vm0, %v3688_v16  ;;  %2969 = vmatprep.subr.mxu1 %v3532_v15 }
  0x21   : > { %2970 = vmatpush3.msra.mxu1 %v3645_v11  ;;  %2985 = vmatprep.mubr.msk.f32.mxu1 %vm3533_vm1, %v3532_v15  ;;  %s3737_s27 = smul.f32 0.25, %s82_s26 }
  0x22   : > { %2971 = vmatprep.subr.mxu1 %v3532_v15  ;;  %2995 = vmatpush3.msra.mxu0 %v3590_v0 }
  0x23   : > { %2972 = vmatpush3.msra.mxu1 %v3640_v10  ;;  %2996 = vmatprep.mubr.msk.f32.mxu0 %vm3533_vm1, %v3532_v15  ;;  %s236_s28 = smul.f32 0.5, %s3737_s27  ;;  %v3814_v42 = vstv %s3737_s27 }
  0x24   : > { %2973 = vmatprep.subr.mxu1 %v3532_v15  ;;  %2999 = vmatprep.subr.mxu0 %v3532_v15  ;;  %s686_s2 = smul.f32 0.16666667, %s3737_s27 }
  0x25   : > { %2974 = vmatpush3.msra.mxu1 %v3635_v9  ;;  %v3740_v22 = vstv %s236_s28 }
  0x26   : > { %2975 = vmatprep.subr.mxu1 %v3532_v15  ;;  %v3853_v56 = vstv %s686_s2 }
  0x27   : > { %2976 = vmatpush3.msra.mxu1 %v3630_v8 }
  0x28   : > { %2977 = vmatprep.subr.mxu1 %v3532_v15 }
  0x29   : > { %2978 = vmatpush3.msra.mxu1 %v3625_v7 }
  0x2a   : > { %2979 = vmatprep.subr.mxu1 %v3532_v15 }
  0x2b   : > { %2980 = vmatpush3.msra.mxu1 %v3620_v6 }
  0x2c   : > { %2981 = vmatprep.subr.mxu1 %v3532_v15 }
  0x2d   : > { %2982 = vmatpush3.msra.mxu1 %v3615_v5 }
  0x2e   : > { %2983 = vmatprep.subr.mxu1 %v3532_v15 }
  0x2f   : > { %2984 = vmatpush3.msra.mxu1 %v3610_v4 }
  0x30   : > { %3018 = vmatprep.subr.mxu1 %v3532_v15 }
  0xe0   : > { %v157_v17 = vpop.f32.mrf.mxu1 }
  0xe1   : > { %v158_v18 = vadd.f32 %v3650_v12, %v157_v17 }
  0xe2   : > { %v2968_v19 = vpop.f32.mrf.mxu1 }
  0xe3   : > { %3477 = vtanh.f32 %v158_v18 }
  0xf0   : > { %v3478_v20 = vpop.eup %3477 }
  0xf1   : > { %2986 = vmatmul.mubr.msk.f32.vlgmr.msra.gmra.mxu1 %vm162_vm2, %v3478_v20 }
  0xf2   : > { %3019 = vmatpush3.msra.mxu1 %v3605_v3  ;;  %3026 = vmatprep.mubr.msk.f32.mxu1 %vm3533_vm1, %v3532_v15 }
  0xf3   : > { %3020 = vmatprep.subr.mxu1 %v3532_v15 }
  0xf4   : > { %3021 = vmatpush3.msra.mxu1 %v3600_v2 }
  0xf5   : > { %3022 = vmatprep.subr.mxu1 %v3532_v15 }
  0xf6   : > { %3023 = vmatpush3.msra.mxu1 %v3595_v1 }
  0xf7   : > { %3024 = vmatprep.subr.mxu1 %v3532_v15 }
  0xf8   : > { %3025 = vmatpush3.msra.mxu1 %v3590_v0 }
  0xf9   : > { %3029 = vmatprep.subr.mxu1 %v3532_v15 }
 0x1b1   : > { %v232_v21 = vpop.f32.mrf.mxu1 }
 0x1b2   : > { %v3743_v23 = vadd.f32 %v3655_v13, %v232_v21 }
 0x1b3   : > { %v2987_v24 = vpop.f32.mrf.mxu1 }
 0x1b4   : > { %v238_v25 = vmul.f32 %v3740_v22, %v3743_v23 }
 0x1b6   : > { %v239_v26 = vadd.f32 %v238_v25, %v3688_v16 }
 0x1b8   : > { %2997 = vmatmul.mubr.msk.f32.vlgmr.msra.gmra.mxu0 %vm71_vm0, %v239_v26 }
 0x1b9   : > { %3000 = vmatpush3.msra.mxu0 %v3645_v11  ;;  %3015 = vmatprep.mubr.msk.f32.mxu0 %vm3533_vm1, %v3532_v15 }
 0x1ba   : > { %3001 = vmatprep.subr.mxu0 %v3532_v15 }
 0x1bb   : > { %3002 = vmatpush3.msra.mxu0 %v3640_v10 }
 0x1bc   : > { %3003 = vmatprep.subr.mxu0 %v3532_v15 }
 0x1bd   : > { %3004 = vmatpush3.msra.mxu0 %v3635_v9 }
 0x1be   : > { %3005 = vmatprep.subr.mxu0 %v3532_v15 }
 0x1bf   : > { %3006 = vmatpush3.msra.mxu0 %v3630_v8 }
 0x1c0   : > { %3007 = vmatprep.subr.mxu0 %v3532_v15 }
 0x1c1   : > { %3008 = vmatpush3.msra.mxu0 %v3625_v7 }
 0x1c2   : > { %3009 = vmatprep.subr.mxu0 %v3532_v15 }
 0x1c3   : > { %3010 = vmatpush3.msra.mxu0 %v3620_v6 }
 0x1c4   : > { %3011 = vmatprep.subr.mxu0 %v3532_v15 }
 0x1c5   : > { %3012 = vmatpush3.msra.mxu0 %v3615_v5 }
 0x1c6   : > { %3013 = vmatprep.subr.mxu0 %v3532_v15 }
 0x1c7   : > { %3014 = vmatpush3.msra.mxu0 %v3610_v4 }
 0x1c8   : > { %3048 = vmatprep.subr.mxu0 %v3532_v15 }
 0x278   : > { %v309_v27 = vpop.f32.mrf.mxu0 }
 0x279   : > { %v310_v28 = vadd.f32 %v3650_v12, %v309_v27 }
 0x27a   : > { %v2998_v29 = vpop.f32.mrf.mxu0 }
 0x27b   : > { %3479 = vtanh.f32 %v310_v28 }
 0x288   : > { %v3480_v30 = vpop.eup %3479 }
 0x289   : > { %3016 = vmatmul.mubr.msk.f32.vlgmr.msra.gmra.mxu0 %vm162_vm2, %v3480_v30 }
 0x28a   : > { %3049 = vmatpush3.msra.mxu0 %v3605_v3  ;;  %3056 = vmatprep.mubr.msk.f32.mxu0 %vm3533_vm1, %v3532_v15 }
 0x28b   : > { %3050 = vmatprep.subr.mxu0 %v3532_v15 }
 0x28c   : > { %3051 = vmatpush3.msra.mxu0 %v3600_v2 }
 0x28d   : > { %3052 = vmatprep.subr.mxu0 %v3532_v15 }
 0x28e   : > { %3053 = vmatpush3.msra.mxu0 %v3595_v1 }
 0x28f   : > { %3054 = vmatprep.subr.mxu0 %v3532_v15 }
 0x290   : > { %3055 = vmatpush3.msra.mxu0 %v3590_v0 }
 0x291   : > { %3059 = vmatprep.subr.mxu0 %v3532_v15 }
 0x349   : > { %v383_v31 = vpop.f32.mrf.mxu0 }
 0x34a   : > { %v384_v32 = vadd.f32 %v3655_v13, %v383_v31 }
 0x34b   : > { %v3017_v33 = vpop.f32.mrf.mxu0 }
 0x34c   : > { %v387_v34 = vmul.f32 %v384_v32, %v3740_v22  ;;  %v687_v40 = vmul.f32 2.0, %v384_v32 }
 0x34e   : > { %v388_v35 = vadd.f32 %v387_v34, %v3688_v16  ;;  %v688_v45 = vadd.f32 %v687_v40, %v3743_v23 }
 0x350   : > { %3027 = vmatmul.mubr.msk.f32.vlgmr.msra.gmra.mxu1 %vm71_vm0, %v388_v35 }
 0x351   : > { %3030 = vmatpush3.msra.mxu1 %v3645_v11  ;;  %3045 = vmatprep.mubr.msk.f32.mxu1 %vm3533_vm1, %v3532_v15 }
 0x352   : > { %3031 = vmatprep.subr.mxu1 %v3532_v15 }
 0x353   : > { %3032 = vmatpush3.msra.mxu1 %v3640_v10 }
 0x354   : > { %3033 = vmatprep.subr.mxu1 %v3532_v15 }
 0x355   : > { %3034 = vmatpush3.msra.mxu1 %v3635_v9 }
 0x356   : > { %3035 = vmatprep.subr.mxu1 %v3532_v15 }
 0x357   : > { %3036 = vmatpush3.msra.mxu1 %v3630_v8 }
 0x358   : > { %3037 = vmatprep.subr.mxu1 %v3532_v15 }
 0x359   : > { %3038 = vmatpush3.msra.mxu1 %v3625_v7 }
 0x35a   : > { %3039 = vmatprep.subr.mxu1 %v3532_v15 }
 0x35b   : > { %3040 = vmatpush3.msra.mxu1 %v3620_v6 }
 0x35c   : > { %3041 = vmatprep.subr.mxu1 %v3532_v15 }
 0x35d   : > { %3042 = vmatpush3.msra.mxu1 %v3615_v5 }
 0x35e   : > { %3043 = vmatprep.subr.mxu1 %v3532_v15 }
 0x35f   : > { %3044 = vmatpush3.msra.mxu1 %v3610_v4 }
 0x360   : > { %3078 = vmatprep.subr.mxu1 %v3532_v15 }
 0x410   : > { %v458_v36 = vpop.f32.mrf.mxu1 }
 0x411   : > { %v459_v37 = vadd.f32 %v3650_v12, %v458_v36 }
 0x412   : > { %v3028_v38 = vpop.f32.mrf.mxu1 }
 0x413   : > { %3481 = vtanh.f32 %v459_v37 }
 0x420   : > { %v3482_v39 = vpop.eup %3481 }
 0x421   : > { %3046 = vmatmul.mubr.msk.f32.vlgmr.msra.gmra.mxu1 %vm162_vm2, %v3482_v39 }
 0x422   : > { %3079 = vmatpush3.msra.mxu1 %v3605_v3  ;;  %3086 = vmatprep.mubr.msk.f32.mxu1 %vm3533_vm1, %v3532_v15 }
 0x423   : > { %3080 = vmatprep.subr.mxu1 %v3532_v15 }
 0x424   : > { %3081 = vmatpush3.msra.mxu1 %v3600_v2 }
 0x425   : > { %3082 = vmatprep.subr.mxu1 %v3532_v15 }
 0x426   : > { %3083 = vmatpush3.msra.mxu1 %v3595_v1 }
 0x427   : > { %3084 = vmatprep.subr.mxu1 %v3532_v15 }
 0x428   : > { %3085 = vmatpush3.msra.mxu1 %v3590_v0 }
 0x429   : > { %3089 = vmatprep.subr.mxu1 %v3532_v15 }
 0x4e1   : > { %v532_v41 = vpop.f32.mrf.mxu1 }
 0x4e2   : > { %v533_v43 = vadd.f32 %v3655_v13, %v532_v41 }
 0x4e3   : > { %v3047_v44 = vpop.f32.mrf.mxu1 }
 0x4e4   : > { %v537_v46 = vmul.f32 %v3814_v42, %v533_v43  ;;  %v689_v47 = vmul.f32 2.0, %v533_v43 }
 0x4e6   : > { %v538_v48 = vadd.f32 %v537_v46, %v3688_v16  ;;  %v690_v49 = vadd.f32 %v689_v47, %v688_v45 }
 0x4e8   : > { %3057 = vmatmul.mubr.msk.f32.vlgmr.msra.gmra.mxu0 %vm71_vm0, %v538_v48 }
 0x4e9   : > { %3060 = vmatpush3.msra.mxu0 %v3645_v11  ;;  %3075 = vmatprep.mubr.msk.f32.mxu0 %vm3533_vm1, %v3532_v15 }
 0x4ea   : > { %3061 = vmatprep.subr.mxu0 %v3532_v15 }
 0x4eb   : > { %3062 = vmatpush3.msra.mxu0 %v3640_v10 }
 0x4ec   : > { %3063 = vmatprep.subr.mxu0 %v3532_v15 }
 0x4ed   : > { %3064 = vmatpush3.msra.mxu0 %v3635_v9 }
 0x4ee   : > { %3065 = vmatprep.subr.mxu0 %v3532_v15 }
 0x4ef   : > { %3066 = vmatpush3.msra.mxu0 %v3630_v8 }
 0x4f0   : > { %3067 = vmatprep.subr.mxu0 %v3532_v15 }
 0x4f1   : > { %3068 = vmatpush3.msra.mxu0 %v3625_v7 }
 0x4f2   : > { %3069 = vmatprep.subr.mxu0 %v3532_v15 }
 0x4f3   : > { %3070 = vmatpush3.msra.mxu0 %v3620_v6 }
 0x4f4   : > { %3071 = vmatprep.subr.mxu0 %v3532_v15 }
 0x4f5   : > { %3072 = vmatpush3.msra.mxu0 %v3615_v5 }
 0x4f6   : > { %3073 = vmatprep.subr.mxu0 %v3532_v15 }
 0x4f7   : > { %3074 = vmatpush3.msra.mxu0 %v3610_v4 }
 0x4f8   : > { %3108 = vmatprep.subr.mxu0 %v3532_v15 }
 0x5a8   : > { %v608_v50 = vpop.f32.mrf.mxu0 }
 0x5a9   : > { %v609_v51 = vadd.f32 %v3650_v12, %v608_v50 }
 0x5aa   : > { %v3058_v52 = vpop.f32.mrf.mxu0 }
 0x5ab   : > { %3483 = vtanh.f32 %v609_v51 }
 0x5b8   : > { %v3484_v53 = vpop.eup %3483 }
 0x5b9   : > { %3076 = vmatmul.mubr.msk.f32.vlgmr.msra.gmra.mxu0 %vm162_vm2, %v3484_v53 }
 0x5ba   : > { %3109 = vmatpush3.msra.mxu0 %v3605_v3  ;;  %3116 = vmatprep.mubr.msk.f32.mxu0 %vm3533_vm1, %v3532_v15 }
 0x5bb   : > { %3110 = vmatprep.subr.mxu0 %v3532_v15 }
 0x5bc   : > { %3111 = vmatpush3.msra.mxu0 %v3600_v2 }
 0x5bd   : > { %3112 = vmatprep.subr.mxu0 %v3532_v15 }
 0x5be   : > { %3113 = vmatpush3.msra.mxu0 %v3595_v1 }
 0x5bf   : > { %3114 = vmatprep.subr.mxu0 %v3532_v15 }
 0x5c0   : > { %3115 = vmatpush3.msra.mxu0 %v3590_v0 }
 0x5c1   : > { %3119 = vmatprep.subr.mxu0 %v3532_v15 }
 0x679   : > { %v682_v54 = vpop.f32.mrf.mxu0 }
 0x67a   : > { %v683_v55 = vadd.f32 %v3655_v13, %v682_v54 }
 0x67b   : > { %v3077_v57 = vpop.f32.mrf.mxu0 }
 0x67c   : > { %v691_v58 = vadd.f32 %v690_v49, %v683_v55 }
 0x67e   : > { %v693_v59 = vmul.f32 %v3853_v56, %v691_v58 }
 0x680   : > { %v3857_v60 = vadd.f32 %v693_v59, %v3688_v16 }
 0x682   : > { %3087 = vmatmul.mubr.msk.f32.vlgmr.msra.gmra.mxu1 %vm71_vm0, %v3857_v60 }
 0x683   : > { %3090 = vmatpush3.msra.mxu1 %v3645_v11  ;;  %3105 = vmatprep.mubr.msk.f32.mxu1 %vm3533_vm1, %v3532_v15 }
 0x684   : > { %3091 = vmatprep.subr.mxu1 %v3532_v15 }
 0x685   : > { %3092 = vmatpush3.msra.mxu1 %v3640_v10 }
 0x686   : > { %3093 = vmatprep.subr.mxu1 %v3532_v15 }
 0x687   : > { %3094 = vmatpush3.msra.mxu1 %v3635_v9 }
 0x688   : > { %3095 = vmatprep.subr.mxu1 %v3532_v15 }
 0x689   : > { %3096 = vmatpush3.msra.mxu1 %v3630_v8 }
 0x68a   : > { %3097 = vmatprep.subr.mxu1 %v3532_v15 }
 0x68b   : > { %3098 = vmatpush3.msra.mxu1 %v3625_v7 }
 0x68c   : > { %3099 = vmatprep.subr.mxu1 %v3532_v15 }
 0x68d   : > { %3100 = vmatpush3.msra.mxu1 %v3620_v6 }
 0x68e   : > { %3101 = vmatprep.subr.mxu1 %v3532_v15 }
 0x68f   : > { %3102 = vmatpush3.msra.mxu1 %v3615_v5 }
 0x690   : > { %3103 = vmatprep.subr.mxu1 %v3532_v15 }
 0x691   : > { %3104 = vmatpush3.msra.mxu1 %v3610_v4 }
 0x692   : > { %3138 = vmatprep.subr.mxu1 %v3532_v15 }
 0x742   : > { %v764_v61 = vpop.f32.mrf.mxu1 }
 0x743   : > { %v765_v62 = vadd.f32 %v3650_v12, %v764_v61 }
 0x744   : > { %v3088_v63 = vpop.f32.mrf.mxu1 }
 0x745   : > { %3485 = vtanh.f32 %v765_v62 }
 0x752   : > { %v3486_v14 = vpop.eup %3485 }
 0x753   : > { %3106 = vmatmul.mubr.msk.f32.vlgmr.msra.gmra.mxu1 %vm162_vm2, %v3486_v14 }
 0x754   : > { %3139 = vmatpush3.msra.mxu1 %v3605_v3  ;;  %3146 = vmatprep.mubr.msk.f32.mxu1 %vm3533_vm1, %v3532_v15 }
 0x755   : > { %3140 = vmatprep.subr.mxu1 %v3532_v15 }
 0x756   : > { %3141 = vmatpush3.msra.mxu1 %v3600_v2 }
 0x757   : > { %3142 = vmatprep.subr.mxu1 %v3532_v15 }
 0x758   : > { %3143 = vmatpush3.msra.mxu1 %v3595_v1 }
 0x759   : > { %3144 = vmatprep.subr.mxu1 %v3532_v15 }
 0x75a   : > { %3145 = vmatpush3.msra.mxu1 %v3590_v0 }
 0x75b   : > { %3149 = vmatprep.subr.mxu1 %v3532_v15 }
 0x813   : > { %v838_v16 = vpop.f32.mrf.mxu1 }
 0x814   : > { %v3892_v17 = vadd.f32 %v3655_v13, %v838_v16 }
 0x815   : > { %v3107_v18 = vpop.f32.mrf.mxu1 }
 0x816   : > { %v842_v19 = vmul.f32 %v3892_v17, %v3740_v22 }
 0x818   : > { %v843_v20 = vadd.f32 %v842_v19, %v3857_v60 }
 0x81a   : > { %3117 = vmatmul.mubr.msk.f32.vlgmr.msra.gmra.mxu0 %vm71_vm0, %v843_v20 }
 0x81b   : > { %3120 = vmatpush3.msra.mxu0 %v3645_v11  ;;  %3135 = vmatprep.mubr.msk.f32.mxu0 %vm3533_vm1, %v3532_v15 }
 0x81c   : > { %3121 = vmatprep.subr.mxu0 %v3532_v15 }
 0x81d   : > { %3122 = vmatpush3.msra.mxu0 %v3640_v10 }
 0x81e   : > { %3123 = vmatprep.subr.mxu0 %v3532_v15 }
 0x81f   : > { %3124 = vmatpush3.msra.mxu0 %v3635_v9 }
 0x820   : > { %3125 = vmatprep.subr.mxu0 %v3532_v15 }
 0x821   : > { %3126 = vmatpush3.msra.mxu0 %v3630_v8 }
 0x822   : > { %3127 = vmatprep.subr.mxu0 %v3532_v15 }
 0x823   : > { %3128 = vmatpush3.msra.mxu0 %v3625_v7 }
 0x824   : > { %3129 = vmatprep.subr.mxu0 %v3532_v15 }
 0x825   : > { %3130 = vmatpush3.msra.mxu0 %v3620_v6 }
 0x826   : > { %3131 = vmatprep.subr.mxu0 %v3532_v15 }
 0x827   : > { %3132 = vmatpush3.msra.mxu0 %v3615_v5 }
 0x828   : > { %3133 = vmatprep.subr.mxu0 %v3532_v15 }
 0x829   : > { %3134 = vmatpush3.msra.mxu0 %v3610_v4 }
 0x82a   : > { %3168 = vmatprep.subr.mxu0 %v3532_v15 }
 0x8da   : > { %v913_v21 = vpop.f32.mrf.mxu0 }
 0x8db   : > { %v914_v23 = vadd.f32 %v3650_v12, %v913_v21 }
 0x8dc   : > { %v3118_v24 = vpop.f32.mrf.mxu0 }
 0x8dd   : > { %3487 = vtanh.f32 %v914_v23 }
 0x8ea   : > { %v3488_v25 = vpop.eup %3487 }
 0x8eb   : > { %3136 = vmatmul.mubr.msk.f32.vlgmr.msra.gmra.mxu0 %vm162_vm2, %v3488_v25 }
 0x8ec   : > { %3169 = vmatpush3.msra.mxu0 %v3605_v3  ;;  %3176 = vmatprep.mubr.msk.f32.mxu0 %vm3533_vm1, %v3532_v15 }
 0x8ed   : > { %3170 = vmatprep.subr.mxu0 %v3532_v15 }
 0x8ee   : > { %3171 = vmatpush3.msra.mxu0 %v3600_v2 }
 0x8ef   : > { %3172 = vmatprep.subr.mxu0 %v3532_v15 }
 0x8f0   : > { %3173 = vmatpush3.msra.mxu0 %v3595_v1 }
 0x8f1   : > { %3174 = vmatprep.subr.mxu0 %v3532_v15 }
 0x8f2   : > { %3175 = vmatpush3.msra.mxu0 %v3590_v0 }
 0x8f3   : > { %3179 = vmatprep.subr.mxu0 %v3532_v15 }
 0x9ab   : > { %v987_v26 = vpop.f32.mrf.mxu0 }
 0x9ac   : > { %v988_v27 = vadd.f32 %v3655_v13, %v987_v26 }
 0x9ad   : > { %v3137_v28 = vpop.f32.mrf.mxu0 }
 0x9ae   : > { %v991_v29 = vmul.f32 %v988_v27, %v3740_v22  ;;  %v1289_v35 = vmul.f32 2.0, %v988_v27 }
 0x9b0   : > { %v992_v30 = vadd.f32 %v991_v29, %v3857_v60  ;;  %v1290_v39 = vadd.f32 %v1289_v35, %v3892_v17 }
 0x9b2   : > { %3147 = vmatmul.mubr.msk.f32.vlgmr.msra.gmra.mxu1 %vm71_vm0, %v992_v30 }
 0x9b3   : > { %3150 = vmatpush3.msra.mxu1 %v3645_v11  ;;  %3165 = vmatprep.mubr.msk.f32.mxu1 %vm3533_vm1, %v3532_v15 }
 0x9b4   : > { %3151 = vmatprep.subr.mxu1 %v3532_v15 }
 0x9b5   : > { %3152 = vmatpush3.msra.mxu1 %v3640_v10 }
 0x9b6   : > { %3153 = vmatprep.subr.mxu1 %v3532_v15 }
 0x9b7   : > { %3154 = vmatpush3.msra.mxu1 %v3635_v9 }
 0x9b8   : > { %3155 = vmatprep.subr.mxu1 %v3532_v15 }
 0x9b9   : > { %3156 = vmatpush3.msra.mxu1 %v3630_v8 }
 0x9ba   : > { %3157 = vmatprep.subr.mxu1 %v3532_v15 }
 0x9bb   : > { %3158 = vmatpush3.msra.mxu1 %v3625_v7 }
 0x9bc   : > { %3159 = vmatprep.subr.mxu1 %v3532_v15 }
 0x9bd   : > { %3160 = vmatpush3.msra.mxu1 %v3620_v6 }
 0x9be   : > { %3161 = vmatprep.subr.mxu1 %v3532_v15 }
 0x9bf   : > { %3162 = vmatpush3.msra.mxu1 %v3615_v5 }
 0x9c0   : > { %3163 = vmatprep.subr.mxu1 %v3532_v15 }
 0x9c1   : > { %3164 = vmatpush3.msra.mxu1 %v3610_v4 }
 0x9c2   : > { %3198 = vmatprep.subr.mxu1 %v3532_v15 }
 0xa72   : > { %v1062_v31 = vpop.f32.mrf.mxu1 }
 0xa73   : > { %v1063_v32 = vadd.f32 %v3650_v12, %v1062_v31 }
 0xa74   : > { %v3148_v33 = vpop.f32.mrf.mxu1 }
 0xa75   : > { %3489 = vtanh.f32 %v1063_v32 }
 0xa82   : > { %v3490_v34 = vpop.eup %3489 }
 0xa83   : > { %3166 = vmatmul.mubr.msk.f32.vlgmr.msra.gmra.mxu1 %vm162_vm2, %v3490_v34 }
 0xa84   : > { %3199 = vmatpush3.msra.mxu1 %v3605_v3  ;;  %3206 = vmatprep.mubr.msk.f32.mxu1 %vm3533_vm1, %v3532_v15 }
 0xa85   : > { %3200 = vmatprep.subr.mxu1 %v3532_v15 }
 0xa86   : > { %3201 = vmatpush3.msra.mxu1 %v3600_v2 }
 0xa87   : > { %3202 = vmatprep.subr.mxu1 %v3532_v15 }
 0xa88   : > { %3203 = vmatpush3.msra.mxu1 %v3595_v1 }
 0xa89   : > { %3204 = vmatprep.subr.mxu1 %v3532_v15 }
 0xa8a   : > { %3205 = vmatpush3.msra.mxu1 %v3590_v0 }
 0xa8b   : > { %3209 = vmatprep.subr.mxu1 %v3532_v15 }
 0xb43   : > { %v1136_v36 = vpop.f32.mrf.mxu1 }
 0xb44   : > { %v1137_v37 = vadd.f32 %v3655_v13, %v1136_v36 }
 0xb45   : > { %v3167_v38 = vpop.f32.mrf.mxu1 }
 0xb46   : > { %v1140_v40 = vmul.f32 %v1137_v37, %v3814_v42  ;;  %v1291_v41 = vmul.f32 2.0, %v1137_v37 }
 0xb48   : > { %v1141_v43 = vadd.f32 %v1140_v40, %v3857_v60  ;;  %v1292_v44 = vadd.f32 %v1291_v41, %v1290_v39 }
 0xb4a   : > { %3177 = vmatmul.mubr.msk.f32.vlgmr.msra.gmra.mxu0 %vm71_vm0, %v1141_v43 }
 0xb4b   : > { %3180 = vmatpush3.msra.mxu0 %v3645_v11  ;;  %3195 = vmatprep.mubr.msk.f32.mxu0 %vm3533_vm1, %v3532_v15 }
 0xb4c   : > { %3181 = vmatprep.subr.mxu0 %v3532_v15 }
 0xb4d   : > { %3182 = vmatpush3.msra.mxu0 %v3640_v10 }
 0xb4e   : > { %3183 = vmatprep.subr.mxu0 %v3532_v15 }
 0xb4f   : > { %3184 = vmatpush3.msra.mxu0 %v3635_v9 }
 0xb50   : > { %3185 = vmatprep.subr.mxu0 %v3532_v15 }
 0xb51   : > { %3186 = vmatpush3.msra.mxu0 %v3630_v8 }
 0xb52   : > { %3187 = vmatprep.subr.mxu0 %v3532_v15 }
 0xb53   : > { %3188 = vmatpush3.msra.mxu0 %v3625_v7 }
 0xb54   : > { %3189 = vmatprep.subr.mxu0 %v3532_v15 }
 0xb55   : > { %3190 = vmatpush3.msra.mxu0 %v3620_v6 }
 0xb56   : > { %3191 = vmatprep.subr.mxu0 %v3532_v15 }
 0xb57   : > { %3192 = vmatpush3.msra.mxu0 %v3615_v5 }
 0xb58   : > { %3193 = vmatprep.subr.mxu0 %v3532_v15 }
 0xb59   : > { %3194 = vmatpush3.msra.mxu0 %v3610_v4 }
 0xb5a   : > { %3228 = vmatprep.subr.mxu0 %v3532_v15 }
 0xc0a   : > { %v1211_v45 = vpop.f32.mrf.mxu0 }
 0xc0b   : > { %v1212_v46 = vadd.f32 %v3650_v12, %v1211_v45 }
 0xc0c   : > { %v3178_v47 = vpop.f32.mrf.mxu0 }
 0xc0d   : > { %3491 = vtanh.f32 %v1212_v46 }
 0xc1a   : > { %v3492_v48 = vpop.eup %3491 }
 0xc1b   : > { %3196 = vmatmul.mubr.msk.f32.vlgmr.msra.gmra.mxu0 %vm162_vm2, %v3492_v48 }
 0xc1c   : > { %3229 = vmatpush3.msra.mxu0 %v3605_v3  ;;  %3236 = vmatprep.mubr.msk.f32.mxu0 %vm3533_vm1, %v3532_v15 }
 0xc1d   : > { %3230 = vmatprep.subr.mxu0 %v3532_v15 }
 0xc1e   : > { %3231 = vmatpush3.msra.mxu0 %v3600_v2 }
 0xc1f   : > { %3232 = vmatprep.subr.mxu0 %v3532_v15 }
 0xc20   : > { %3233 = vmatpush3.msra.mxu0 %v3595_v1 }
 0xc21   : > { %3234 = vmatprep.subr.mxu0 %v3532_v15 }
 0xc22   : > { %3235 = vmatpush3.msra.mxu0 %v3590_v0 }
 0xc23   : > { %3239 = vmatprep.subr.mxu0 %v3532_v15 }
 0xcdb   : > { %v1285_v49 = vpop.f32.mrf.mxu0 }
 0xcdc   : > { %v1286_v50 = vadd.f32 %v3655_v13, %v1285_v49 }
 0xcdd   : > { %v3197_v51 = vpop.f32.mrf.mxu0 }
 0xcde   : > { %v1293_v52 = vadd.f32 %v1292_v44, %v1286_v50 }
 0xce0   : > { %v1294_v53 = vmul.f32 %v1293_v52, %v3853_v56 }
 0xce2   : > { %v4000_v54 = vadd.f32 %v1294_v53, %v3857_v60 }
 0xce4   : > { %3207 = vmatmul.mubr.msk.f32.vlgmr.msra.gmra.mxu1 %vm71_vm0, %v4000_v54 }
 0xce5   : > { %3210 = vmatpush3.msra.mxu1 %v3645_v11  ;;  %3225 = vmatprep.mubr.msk.f32.mxu1 %vm3533_vm1, %v3532_v15 }
 0xce6   : > { %3211 = vmatprep.subr.mxu1 %v3532_v15 }
 0xce7   : > { %3212 = vmatpush3.msra.mxu1 %v3640_v10 }
 0xce8   : > { %3213 = vmatprep.subr.mxu1 %v3532_v15 }
 0xce9   : > { %3214 = vmatpush3.msra.mxu1 %v3635_v9 }
 0xcea   : > { %3215 = vmatprep.subr.mxu1 %v3532_v15 }
 0xceb   : > { %3216 = vmatpush3.msra.mxu1 %v3630_v8 }
 0xcec   : > { %3217 = vmatprep.subr.mxu1 %v3532_v15 }
 0xced   : > { %3218 = vmatpush3.msra.mxu1 %v3625_v7 }
 0xcee   : > { %3219 = vmatprep.subr.mxu1 %v3532_v15 }
 0xcef   : > { %3220 = vmatpush3.msra.mxu1 %v3620_v6 }
 0xcf0   : > { %3221 = vmatprep.subr.mxu1 %v3532_v15 }
 0xcf1   : > { %3222 = vmatpush3.msra.mxu1 %v3615_v5 }
 0xcf2   : > { %3223 = vmatprep.subr.mxu1 %v3532_v15 }
 0xcf3   : > { %3224 = vmatpush3.msra.mxu1 %v3610_v4 }
 0xcf4   : > { %3258 = vmatprep.subr.mxu1 %v3532_v15 }
 0xda4   : > { %v1365_v55 = vpop.f32.mrf.mxu1 }
 0xda5   : > { %v1366_v57 = vadd.f32 %v3650_v12, %v1365_v55 }
 0xda6   : > { %v3208_v58 = vpop.f32.mrf.mxu1 }
 0xda7   : > { %3493 = vtanh.f32 %v1366_v57 }
 0xdb4   : > { %v3494_v59 = vpop.eup %3493 }
 0xdb5   : > { %3226 = vmatmul.mubr.msk.f32.vlgmr.msra.gmra.mxu1 %vm162_vm2, %v3494_v59 }
 0xdb6   : > { %3259 = vmatpush3.msra.mxu1 %v3605_v3  ;;  %3266 = vmatprep.mubr.msk.f32.mxu1 %vm3533_vm1, %v3532_v15 }
 0xdb7   : > { %3260 = vmatprep.subr.mxu1 %v3532_v15 }
 0xdb8   : > { %3261 = vmatpush3.msra.mxu1 %v3600_v2 }
 0xdb9   : > { %3262 = vmatprep.subr.mxu1 %v3532_v15 }
 0xdba   : > { %3263 = vmatpush3.msra.mxu1 %v3595_v1 }
 0xdbb   : > { %3264 = vmatprep.subr.mxu1 %v3532_v15 }
 0xdbc   : > { %3265 = vmatpush3.msra.mxu1 %v3590_v0 }
 0xdbd   : > { %3269 = vmatprep.subr.mxu1 %v3532_v15 }
 0xe75   : > { %v1439_v60 = vpop.f32.mrf.mxu1 }
 0xe76   : > { %v4035_v61 = vadd.f32 %v3655_v13, %v1439_v60 }
 0xe77   : > { %v3227_v62 = vpop.f32.mrf.mxu1 }
 0xe78   : > { %v1443_v63 = vmul.f32 %v4035_v61, %v3740_v22 }
 0xe7a   : > { %v1444_v14 = vadd.f32 %v1443_v63, %v4000_v54 }
 0xe7c   : > { %3237 = vmatmul.mubr.msk.f32.vlgmr.msra.gmra.mxu0 %vm71_vm0, %v1444_v14 }
 0xe7d   : > { %3240 = vmatpush3.msra.mxu0 %v3645_v11  ;;  %3255 = vmatprep.mubr.msk.f32.mxu0 %vm3533_vm1, %v3532_v15 }
 0xe7e   : > { %3241 = vmatprep.subr.mxu0 %v3532_v15 }
 0xe7f   : > { %3242 = vmatpush3.msra.mxu0 %v3640_v10 }
 0xe80   : > { %3243 = vmatprep.subr.mxu0 %v3532_v15 }
 0xe81   : > { %3244 = vmatpush3.msra.mxu0 %v3635_v9 }
 0xe82   : > { %3245 = vmatprep.subr.mxu0 %v3532_v15 }
 0xe83   : > { %3246 = vmatpush3.msra.mxu0 %v3630_v8 }
 0xe84   : > { %3247 = vmatprep.subr.mxu0 %v3532_v15 }
 0xe85   : > { %3248 = vmatpush3.msra.mxu0 %v3625_v7 }
 0xe86   : > { %3249 = vmatprep.subr.mxu0 %v3532_v15 }
 0xe87   : > { %3250 = vmatpush3.msra.mxu0 %v3620_v6 }
 0xe88   : > { %3251 = vmatprep.subr.mxu0 %v3532_v15 }
 0xe89   : > { %3252 = vmatpush3.msra.mxu0 %v3615_v5 }
 0xe8a   : > { %3253 = vmatprep.subr.mxu0 %v3532_v15 }
 0xe8b   : > { %3254 = vmatpush3.msra.mxu0 %v3610_v4 }
 0xe8c   : > { %3288 = vmatprep.subr.mxu0 %v3532_v15 }
 0xf3c   : > { %v1514_v16 = vpop.f32.mrf.mxu0 }
 0xf3d   : > { %v1515_v17 = vadd.f32 %v3650_v12, %v1514_v16 }
 0xf3e   : > { %v3238_v18 = vpop.f32.mrf.mxu0 }
 0xf3f   : > { %3495 = vtanh.f32 %v1515_v17 }
 0xf4c   : > { %v3496_v19 = vpop.eup %3495 }
 0xf4d   : > { %3256 = vmatmul.mubr.msk.f32.vlgmr.msra.gmra.mxu0 %vm162_vm2, %v3496_v19 }
 0xf4e   : > { %3289 = vmatpush3.msra.mxu0 %v3605_v3  ;;  %3296 = vmatprep.mubr.msk.f32.mxu0 %vm3533_vm1, %v3532_v15 }
 0xf4f   : > { %3290 = vmatprep.subr.mxu0 %v3532_v15 }
 0xf50   : > { %3291 = vmatpush3.msra.mxu0 %v3600_v2 }
 0xf51   : > { %3292 = vmatprep.subr.mxu0 %v3532_v15 }
 0xf52   : > { %3293 = vmatpush3.msra.mxu0 %v3595_v1 }
 0xf53   : > { %3294 = vmatprep.subr.mxu0 %v3532_v15 }
 0xf54   : > { %3295 = vmatpush3.msra.mxu0 %v3590_v0 }
 0xf55   : > { %3299 = vmatprep.subr.mxu0 %v3532_v15 }
0x100d   : > { %v1588_v20 = vpop.f32.mrf.mxu0 }
0x100e   : > { %v1589_v21 = vadd.f32 %v3655_v13, %v1588_v20 }
0x100f   : > { %v3257_v23 = vpop.f32.mrf.mxu0 }
0x1010   : > { %v1592_v24 = vmul.f32 %v1589_v21, %v3740_v22  ;;  %v1890_v30 = vmul.f32 2.0, %v1589_v21 }
0x1012   : > { %v1593_v25 = vadd.f32 %v1592_v24, %v4000_v54  ;;  %v1891_v34 = vadd.f32 %v1890_v30, %v4035_v61 }
0x1014   : > { %3267 = vmatmul.mubr.msk.f32.vlgmr.msra.gmra.mxu1 %vm71_vm0, %v1593_v25 }
0x1015   : > { %3270 = vmatpush3.msra.mxu1 %v3645_v11  ;;  %3285 = vmatprep.mubr.msk.f32.mxu1 %vm3533_vm1, %v3532_v15 }
0x1016   : > { %3271 = vmatprep.subr.mxu1 %v3532_v15 }
0x1017   : > { %3272 = vmatpush3.msra.mxu1 %v3640_v10 }
0x1018   : > { %3273 = vmatprep.subr.mxu1 %v3532_v15 }
0x1019   : > { %3274 = vmatpush3.msra.mxu1 %v3635_v9 }
0x101a   : > { %3275 = vmatprep.subr.mxu1 %v3532_v15 }
0x101b   : > { %3276 = vmatpush3.msra.mxu1 %v3630_v8 }
0x101c   : > { %3277 = vmatprep.subr.mxu1 %v3532_v15 }
0x101d   : > { %3278 = vmatpush3.msra.mxu1 %v3625_v7 }
0x101e   : > { %3279 = vmatprep.subr.mxu1 %v3532_v15 }
0x101f   : > { %3280 = vmatpush3.msra.mxu1 %v3620_v6 }
0x1020   : > { %3281 = vmatprep.subr.mxu1 %v3532_v15 }
0x1021   : > { %3282 = vmatpush3.msra.mxu1 %v3615_v5 }
0x1022   : > { %3283 = vmatprep.subr.mxu1 %v3532_v15 }
0x1023   : > { %3284 = vmatpush3.msra.mxu1 %v3610_v4 }
0x1024   : > { %3318 = vmatprep.subr.mxu1 %v3532_v15 }
0x10d4   : > { %v1663_v26 = vpop.f32.mrf.mxu1 }
0x10d5   : > { %v1664_v27 = vadd.f32 %v3650_v12, %v1663_v26 }
0x10d6   : > { %v3268_v28 = vpop.f32.mrf.mxu1 }
0x10d7   : > { %3497 = vtanh.f32 %v1664_v27 }
0x10e4   : > { %v3498_v29 = vpop.eup %3497 }
0x10e5   : > { %3286 = vmatmul.mubr.msk.f32.vlgmr.msra.gmra.mxu1 %vm162_vm2, %v3498_v29 }
0x10e6   : > { %3319 = vmatpush3.msra.mxu1 %v3605_v3  ;;  %3326 = vmatprep.mubr.msk.f32.mxu1 %vm3533_vm1, %v3532_v15 }
0x10e7   : > { %3320 = vmatprep.subr.mxu1 %v3532_v15 }
0x10e8   : > { %3321 = vmatpush3.msra.mxu1 %v3600_v2 }
0x10e9   : > { %3322 = vmatprep.subr.mxu1 %v3532_v15 }
0x10ea   : > { %3323 = vmatpush3.msra.mxu1 %v3595_v1 }
0x10eb   : > { %3324 = vmatprep.subr.mxu1 %v3532_v15 }
0x10ec   : > { %3325 = vmatpush3.msra.mxu1 %v3590_v0 }
0x10ed   : > { %3329 = vmatprep.subr.mxu1 %v3532_v15 }
0x11a5   : > { %v1737_v31 = vpop.f32.mrf.mxu1 }
0x11a6   : > { %v1738_v32 = vadd.f32 %v3655_v13, %v1737_v31 }
0x11a7   : > { %v3287_v33 = vpop.f32.mrf.mxu1 }
0x11a8   : > { %v1741_v35 = vmul.f32 %v1738_v32, %v3814_v42  ;;  %v1892_v36 = vmul.f32 2.0, %v1738_v32 }
0x11aa   : > { %v1742_v37 = vadd.f32 %v1741_v35, %v4000_v54  ;;  %v1893_v38 = vadd.f32 %v1892_v36, %v1891_v34 }
0x11ac   : > { %3297 = vmatmul.mubr.msk.f32.vlgmr.msra.gmra.mxu0 %vm71_vm0, %v1742_v37 }
0x11ad   : > { %3300 = vmatpush3.msra.mxu0 %v3645_v11  ;;  %3315 = vmatprep.mubr.msk.f32.mxu0 %vm3533_vm1, %v3532_v15 }
0x11ae   : > { %3301 = vmatprep.subr.mxu0 %v3532_v15 }
0x11af   : > { %3302 = vmatpush3.msra.mxu0 %v3640_v10 }
0x11b0   : > { %3303 = vmatprep.subr.mxu0 %v3532_v15 }
0x11b1   : > { %3304 = vmatpush3.msra.mxu0 %v3635_v9 }
0x11b2   : > { %3305 = vmatprep.subr.mxu0 %v3532_v15 }
0x11b3   : > { %3306 = vmatpush3.msra.mxu0 %v3630_v8 }
0x11b4   : > { %3307 = vmatprep.subr.mxu0 %v3532_v15 }
0x11b5   : > { %3308 = vmatpush3.msra.mxu0 %v3625_v7 }
0x11b6   : > { %3309 = vmatprep.subr.mxu0 %v3532_v15 }
0x11b7   : > { %3310 = vmatpush3.msra.mxu0 %v3620_v6 }
0x11b8   : > { %3311 = vmatprep.subr.mxu0 %v3532_v15 }
0x11b9   : > { %3312 = vmatpush3.msra.mxu0 %v3615_v5 }
0x11ba   : > { %3313 = vmatprep.subr.mxu0 %v3532_v15 }
0x11bb   : > { %3314 = vmatpush3.msra.mxu0 %v3610_v4 }
0x11bc   : > { %3348 = vmatprep.subr.mxu0 %v3532_v15 }
0x126c   : > { %v1812_v39 = vpop.f32.mrf.mxu0 }
0x126d   : > { %v1813_v40 = vadd.f32 %v3650_v12, %v1812_v39 }
0x126e   : > { %v3298_v41 = vpop.f32.mrf.mxu0 }
0x126f   : > { %3499 = vtanh.f32 %v1813_v40 }
0x127c   : > { %v3500_v43 = vpop.eup %3499 }
0x127d   : > { %3316 = vmatmul.mubr.msk.f32.vlgmr.msra.gmra.mxu0 %vm162_vm2, %v3500_v43  ;;  %v2510_v43 = vld [vmem:[%s4355_s6 + $0x10] sm:$0xff] (%p75_p5) }
0x127e   : > { %3349 = vmatpush3.msra.mxu0 %v3605_v3  ;;  %3356 = vmatprep.mubr.msk.f32.mxu0 %vm3533_vm1, %v3532_v15 }
0x127f   : > { %3350 = vmatprep.subr.mxu0 %v3532_v15 }
0x1280   : > { %3351 = vmatpush3.msra.mxu0 %v3600_v2 }
0x1281   : > { %3352 = vmatprep.subr.mxu0 %v3532_v15 }
0x1282   : > { %3353 = vmatpush3.msra.mxu0 %v3595_v1 }
0x1283   : > { %3354 = vmatprep.subr.mxu0 %v3532_v15 }
0x1284   : > { %3355 = vmatpush3.msra.mxu0 %v3590_v0 }
0x1285   : > { %3359 = vmatprep.subr.mxu0 %v3532_v15 }
0x133d   : > { %v1886_v44 = vpop.f32.mrf.mxu0 }
0x133e   : > { %v1887_v45 = vadd.f32 %v3655_v13, %v1886_v44 }
0x133f   : > { %v3317_v46 = vpop.f32.mrf.mxu0 }
0x1340   : > { %v1894_v47 = vadd.f32 %v1893_v38, %v1887_v45 }
0x1342   : > { %v1895_v48 = vmul.f32 %v1894_v47, %v3853_v56 }
0x1344   : > { %v4143_v49 = vadd.f32 %v1895_v48, %v4000_v54 }
0x1346   : > { %3327 = vmatmul.mubr.msk.f32.vlgmr.msra.gmra.mxu1 %vm71_vm0, %v4143_v49 }
0x1347   : > { %3330 = vmatpush3.msra.mxu1 %v3645_v11  ;;  %3345 = vmatprep.mubr.msk.f32.mxu1 %vm3533_vm1, %v3532_v15 }
0x1348   : > { %3331 = vmatprep.subr.mxu1 %v3532_v15 }
0x1349   : > { %3332 = vmatpush3.msra.mxu1 %v3640_v10 }
0x134a   : > { %3333 = vmatprep.subr.mxu1 %v3532_v15 }
0x134b   : > { %3334 = vmatpush3.msra.mxu1 %v3635_v9 }
0x134c   : > { %3335 = vmatprep.subr.mxu1 %v3532_v15 }
0x134d   : > { %3336 = vmatpush3.msra.mxu1 %v3630_v8 }
0x134e   : > { %3337 = vmatprep.subr.mxu1 %v3532_v15 }
0x134f   : > { %3338 = vmatpush3.msra.mxu1 %v3625_v7 }
0x1350   : > { %3339 = vmatprep.subr.mxu1 %v3532_v15 }
0x1351   : > { %3340 = vmatpush3.msra.mxu1 %v3620_v6 }
0x1352   : > { %3341 = vmatprep.subr.mxu1 %v3532_v15 }
0x1353   : > { %3342 = vmatpush3.msra.mxu1 %v3615_v5 }
0x1354   : > { %3343 = vmatprep.subr.mxu1 %v3532_v15 }
0x1355   : > { %3344 = vmatpush3.msra.mxu1 %v3610_v4 }
0x1356   : > { %3378 = vmatprep.subr.mxu1 %v3532_v15 }
0x1406   : > { %v1966_v50 = vpop.f32.mrf.mxu1 }
0x1407   : > { %v1967_v51 = vadd.f32 %v3650_v12, %v1966_v50 }
0x1408   : > { %v3328_v52 = vpop.f32.mrf.mxu1 }
0x1409   : > { %3501 = vtanh.f32 %v1967_v51 }
0x1416   : > { %v3502_v53 = vpop.eup %3501 }
0x1417   : > { %3346 = vmatmul.mubr.msk.f32.vlgmr.msra.gmra.mxu1 %vm162_vm2, %v3502_v53 }
0x1418   : > { %3379 = vmatpush3.msra.mxu1 %v3605_v3  ;;  %3386 = vmatprep.mubr.msk.f32.mxu1 %vm3533_vm1, %v3532_v15 }
0x1419   : > { %3380 = vmatprep.subr.mxu1 %v3532_v15 }
0x141a   : > { %3381 = vmatpush3.msra.mxu1 %v3600_v2 }
0x141b   : > { %3382 = vmatprep.subr.mxu1 %v3532_v15 }
0x141c   : > { %3383 = vmatpush3.msra.mxu1 %v3595_v1 }
0x141d   : > { %3384 = vmatprep.subr.mxu1 %v3532_v15 }
0x141e   : > { %3385 = vmatpush3.msra.mxu1 %v3590_v0 }
0x141f   : > { %3389 = vmatprep.subr.mxu1 %v3532_v15 }
0x14d7   : > { %v2040_v54 = vpop.f32.mrf.mxu1 }
0x14d8   : > { %v4178_v55 = vadd.f32 %v3655_v13, %v2040_v54 }
0x14d9   : > { %v3347_v57 = vpop.f32.mrf.mxu1 }
0x14da   : > { %v2044_v58 = vmul.f32 %v4178_v55, %v3740_v22 }
0x14dc   : > { %v2045_v59 = vadd.f32 %v2044_v58, %v4143_v49 }
0x14de   : > { %3357 = vmatmul.mubr.msk.f32.vlgmr.msra.gmra.mxu0 %vm71_vm0, %v2045_v59 }
0x14df   : > { %3360 = vmatpush3.msra.mxu0 %v3645_v11  ;;  %3375 = vmatprep.mubr.msk.f32.mxu0 %vm3533_vm1, %v3532_v15 }
0x14e0   : > { %3361 = vmatprep.subr.mxu0 %v3532_v15 }
0x14e1   : > { %3362 = vmatpush3.msra.mxu0 %v3640_v10 }
0x14e2   : > { %3363 = vmatprep.subr.mxu0 %v3532_v15 }
0x14e3   : > { %3364 = vmatpush3.msra.mxu0 %v3635_v9 }
0x14e4   : > { %3365 = vmatprep.subr.mxu0 %v3532_v15 }
0x14e5   : > { %3366 = vmatpush3.msra.mxu0 %v3630_v8 }
0x14e6   : > { %3367 = vmatprep.subr.mxu0 %v3532_v15 }
0x14e7   : > { %3368 = vmatpush3.msra.mxu0 %v3625_v7 }
0x14e8   : > { %3369 = vmatprep.subr.mxu0 %v3532_v15 }
0x14e9   : > { %3370 = vmatpush3.msra.mxu0 %v3620_v6 }
0x14ea   : > { %3371 = vmatprep.subr.mxu0 %v3532_v15 }
0x14eb   : > { %3372 = vmatpush3.msra.mxu0 %v3615_v5 }
0x14ec   : > { %3373 = vmatprep.subr.mxu0 %v3532_v15 }
0x14ed   : > { %3374 = vmatpush3.msra.mxu0 %v3610_v4 }
0x14ee   : > { %3408 = vmatprep.subr.mxu0 %v3532_v15 }
0x159e   : > { %v2115_v60 = vpop.f32.mrf.mxu0 }
0x159f   : > { %v2116_v61 = vadd.f32 %v3650_v12, %v2115_v60 }
0x15a0   : > { %v3358_v62 = vpop.f32.mrf.mxu0 }
0x15a1   : > { %3503 = vtanh.f32 %v2116_v61 }
0x15ae   : > { %v3504_v63 = vpop.eup %3503 }
0x15af   : > { %3376 = vmatmul.mubr.msk.f32.vlgmr.msra.gmra.mxu0 %vm162_vm2, %v3504_v63 }
0x15b0   : > { %3409 = vmatpush3.msra.mxu0 %v3605_v3  ;;  %3416 = vmatprep.mubr.msk.f32.mxu0 %vm3533_vm1, %v3532_v15 }
0x15b1   : > { %3410 = vmatprep.subr.mxu0 %v3532_v15 }
0x15b2   : > { %3411 = vmatpush3.msra.mxu0 %v3600_v2 }
0x15b3   : > { %3412 = vmatprep.subr.mxu0 %v3532_v15 }
0x15b4   : > { %3413 = vmatpush3.msra.mxu0 %v3595_v1 }
0x15b5   : > { %3414 = vmatprep.subr.mxu0 %v3532_v15 }
0x15b6   : > { %3415 = vmatpush3.msra.mxu0 %v3590_v0  ;;  %v2508_v0 = vld [vmem:[%s4355_s6] sm:$0xff] (%p75_p5) }
0x15b7   : > { %3419 = vmatprep.subr.mxu0 %v3532_v15 }
0x166f   : > { %v2189_v14 = vpop.f32.mrf.mxu0 }
0x1670   : > { %v2190_v16 = vadd.f32 %v3655_v13, %v2189_v14 }
0x1671   : > { %v3377_v17 = vpop.f32.mrf.mxu0 }
0x1672   : > { %v2193_v18 = vmul.f32 %v2190_v16, %v3740_v22  ;;  %v2491_v24 = vmul.f32 2.0, %v2190_v16 }
0x1674   : > { %v2194_v19 = vadd.f32 %v2193_v18, %v4143_v49  ;;  %v2492_v28 = vadd.f32 %v2491_v24, %v4178_v55 }
0x1676   : > { %3387 = vmatmul.mubr.msk.f32.vlgmr.msra.gmra.mxu1 %vm71_vm0, %v2194_v19 }
0x1677   : > { %3390 = vmatpush3.msra.mxu1 %v3645_v11  ;;  %3405 = vmatprep.mubr.msk.f32.mxu1 %vm3533_vm1, %v3532_v15 }
0x1678   : > { %3391 = vmatprep.subr.mxu1 %v3532_v15 }
0x1679   : > { %3392 = vmatpush3.msra.mxu1 %v3640_v10 }
0x167a   : > { %3393 = vmatprep.subr.mxu1 %v3532_v15 }
0x167b   : > { %3394 = vmatpush3.msra.mxu1 %v3635_v9 }
0x167c   : > { %3395 = vmatprep.subr.mxu1 %v3532_v15 }
0x167d   : > { %3396 = vmatpush3.msra.mxu1 %v3630_v8 }
0x167e   : > { %3397 = vmatprep.subr.mxu1 %v3532_v15 }
0x167f   : > { %3398 = vmatpush3.msra.mxu1 %v3625_v7 }
0x1680   : > { %3399 = vmatprep.subr.mxu1 %v3532_v15 }
0x1681   : > { %3400 = vmatpush3.msra.mxu1 %v3620_v6 }
0x1682   : > { %3401 = vmatprep.subr.mxu1 %v3532_v15 }
0x1683   : > { %3402 = vmatpush3.msra.mxu1 %v3615_v5 }
0x1684   : > { %3403 = vmatprep.subr.mxu1 %v3532_v15 }
0x1685   : > { %3404 = vmatpush3.msra.mxu1 %v3610_v4 }
0x1736   : > { %v2264_v22 = vpop.f32.mrf.mxu1 }
0x1737   : > { %v2265_v20 = vadd.f32 %v3650_v12, %v2264_v22 }
0x1738   : > { %v3388_v21 = vpop.f32.mrf.mxu1 }
0x1739   : > { %3505 = vtanh.f32 %v2265_v20 }
0x1746   : > { %v3506_v23 = vpop.eup %3505 }
0x1747   : > { %3406 = vmatmul.mubr.msk.f32.vlgmr.msra.gmra.mxu1 %vm162_vm2, %v3506_v23 }
0x1807   : > { %v2338_v25 = vpop.f32.mrf.mxu1 }
0x1808   : > { %v2339_v26 = vadd.f32 %v3655_v13, %v2338_v25 }
0x1809   : > { %v3407_v27 = vpop.f32.mrf.mxu1 }
0x180a   : > { %v2342_v29 = vmul.f32 %v2339_v26, %v3814_v42  ;;  %v2493_v30 = vmul.f32 2.0, %v2339_v26 }
0x180c   : > { %v2343_v31 = vadd.f32 %v2342_v29, %v4143_v49  ;;  %v2494_v32 = vadd.f32 %v2493_v30, %v2492_v28 }
0x180e   : > { %3417 = vmatmul.mubr.msk.f32.vlgmr.msra.gmra.mxu0 %vm71_vm0, %v2343_v31 }
0x180f   : > { %3420 = vmatpush3.msra.mxu0 %v3645_v11  ;;  %3435 = vmatprep.mubr.msk.f32.mxu0 %vm3533_vm1, %v3532_v15 }
0x1810   : > { %3421 = vmatprep.subr.mxu0 %v3532_v15 }
0x1811   : > { %3422 = vmatpush3.msra.mxu0 %v3640_v10 }
0x1812   : > { %3423 = vmatprep.subr.mxu0 %v3532_v15 }
0x1813   : > { %3424 = vmatpush3.msra.mxu0 %v3635_v9  ;;  %v2713_v9 = vld [vmem:[%s4356_s7] ss:$0 sm:$0xff] (%p75_p5) }
0x1814   : > { %3425 = vmatprep.subr.mxu0 %v3532_v15 }
0x1815   : > { %3426 = vmatpush3.msra.mxu0 %v3630_v8 }
0x1816   : > { %3427 = vmatprep.subr.mxu0 %v3532_v15 }
0x1817   : > { %3428 = vmatpush3.msra.mxu0 %v3625_v7 }
0x1818   : > { %3429 = vmatprep.subr.mxu0 %v3532_v15 }
0x1819   : > { %3430 = vmatpush3.msra.mxu0 %v3620_v6 }
0x181a   : > { %3431 = vmatprep.subr.mxu0 %v3532_v15 }
0x181b   : > { %3432 = vmatpush3.msra.mxu0 %v3615_v5 }
0x181c   : > { %3433 = vmatprep.subr.mxu0 %v3532_v15  ;;  %v2511_v15 = vld [vmem:[%s4355_s6 + $0x18] sm:$0xff] (%p75_p5) }
0x181d   : > { %3434 = vmatpush3.msra.mxu0 %v3610_v4  ;;  %3458 = vmatprep.subr.mxu1 (%p75_p5), %v2511_v15 }
0x181e   :  { %3438 = vmatprep.subr.mxu0 (%p75_p5), %v2511_v15  ;;  %3462 = vmatpush3.msra.mxu1 (%p75_p5), %v2511_v15 }
0x181f   :  { %3459 = vmatprep.subr.mxu1 (%p75_p5), %v2510_v43 }
0x1820   :  { %3463 = vmatpush3.msra.mxu1 (%p75_p5), %v2510_v43 }
0x18ce   : > { %v2413_v42 = vpop.f32.mrf.mxu0 }
0x18cf   : > { %v2414_v33 = vadd.f32 %v3650_v12, %v2413_v42 }
0x18d0   : > { %v3418_v34 = vpop.f32.mrf.mxu0 }
0x18d1   : > { %3507 = vtanh.f32 %v2414_v33 }
0x18de   : > { %v3508_v35 = vpop.eup %3507 }
0x18df   : > { %3436 = vmatmul.mubr.msk.f32.vlgmr.msra.gmra.mxu0 %vm162_vm2, %v3508_v35 }
0x18e0   :  { %3439 = vmatpush3.msra.mxu0 (%p75_p5), %v2511_v15 }
0x18e1   :  { %3440 = vmatprep.subr.mxu0 (%p75_p5), %v2510_v43 }
0x18e2   :  { %3441 = vmatpush3.msra.mxu0 (%p75_p5), %v2510_v43 }
0x199f   : > { %v2487_v36 = vpop.f32.mrf.mxu0 }
0x19a0   : > { %v2488_v37 = vadd.f32 %v3655_v13, %v2487_v36 }
0x19a1   : > { %v3437_v38 = vpop.f32.mrf.mxu0 }
0x19a2   : > { %v2495_v39 = vadd.f32 %v2494_v32, %v2488_v37 }
0x19a4   : > { %v2496_v40 = vmul.f32 %v2495_v39, %v3853_v56  ;;  %77 = sbr.rel (!%p75_p5) target bundleno = 23 (0x17), region = 73  ;;  %v2509_v56 = vld [vmem:[%s4355_s6 + $0x8] sm:$0xff] (%p75_p5) }
0x19a5   :  { %3442 = vmatprep.subr.mxu0 (%p75_p5), %v2509_v56  ;;  %3460 = vmatprep.subr.mxu1 (%p75_p5), %v2509_v56 }
0x19a6   : > { %v2497_v41 = vadd.f32 %v2496_v40, %v4143_v49  ;;  %3443 = vmatpush3.msra.mxu0 (%p75_p5), %v2509_v56  ;;  %3464 = vmatpush3.msra.mxu1 (%p75_p5), %v2509_v56 }
0x19a7   :  { %3444 = vmatprep.subr.mxu0 (%p75_p5), %v2508_v0  ;;  %3461 = vmatprep.subr.mxu1 (%p75_p5), %v2508_v0 }
0x19a8   : > { %2712 = vst.msk [vmem:[%s3681_s22 + $0x8] sm:$0xff] %vm71_vm0, %v2497_v41  ;;  %3445 = vmatpush3.msra.mxu0 (%p75_p5), %v2508_v0  ;;  %3465 = vmatpush3.msra.mxu1 (%p75_p5), %v2508_v0 }
0x19af   :  { %v2500_v1 = vld [vmem:[%s4357_s8] sm:$0xff]  ;;  %v2501_v3 = vld [vmem:[%s4357_s8 + $0x8] sm:$0xff]  ;;  %v2502_v5 = vld [vmem:[%s4357_s8 + $0x10] sm:$0xff] }
0x19b0   :  { %v2504_v2 = vld [vmem:[%s4357_s8 + $0x20] sm:$0xff]  ;;  %v2505_v4 = vld [vmem:[%s4357_s8 + $0x28] sm:$0xff]  ;;  %v2506_v6 = vld [vmem:[%s4357_s8 + $0x30] sm:$0xff]  ;;  %3446 = vmatprep.mubr.msk.f32.mxu0 %vm71_vm0, %v2500_v1 }
0x19b1   :  { %3452 = vmatprep.mubr.msk.f32.mxu1 %vm71_vm0, %v2504_v2  ;;  %3447 = vmatmul.mubr.msk.f32.vlgmr.msra.gmra.mxu0 %vm71_vm0, %v2501_v3  ;;  %v2503_v7 = vld [vmem:[%s4357_s8 + $0x18] sm:$0xff] }
0x19b2   :  { %3453 = vmatmul.mubr.msk.f32.vlgmr.msra.gmra.mxu1 %vm71_vm0, %v2505_v4  ;;  %3449 = vmatprep.mubr.msk.f32.mxu0 %vm71_vm0, %v2502_v5  ;;  %v2507_v8 = vld [vmem:[%s4357_s8 + $0x38] sm:$0xff] }
0x19b3   :  { %3455 = vmatprep.mubr.msk.f32.mxu1 %vm71_vm0, %v2506_v6 }
0x19b5   :  { %3450 = vmatmul.mubr.msk.f32.gmra.mxu0 %vm71_vm0, %v2503_v7 }
0x19b6   :  { %3456 = vmatmul.mubr.msk.f32.gmra.mxu1 %vm71_vm0, %v2507_v8 }
0x1a71   :  { %v3448_v10 = vpop.f32.mrf.mxu0 }
0x1a72   :  { %v3454_v11 = vpop.f32.mrf.mxu1  ;;  %v2615_v12 = vadd.f32 %v3448_v10, %v2713_v9 }
0x1a73   :  { %v2635_v13 = vadd.f32 %v3454_v11, %v2713_v9  ;;  %v2609_v44 = vpop.f32.mrf.mxu0 }
0x1a74   :  { %v2629_v45 = vpop.f32.mrf.mxu1  ;;  %2650 = vst.msk [vmem:[%s4358_s9 + $0x8] sm:$0xff] %vm2648_vm3, %v2615_v12  ;;  %v2610_v46 = vadd.f32 %v2713_v9, %v2609_v44 }
0x1a75   :  { %2654 = vst.msk [vmem:[%s4358_s9 + $0x28] sm:$0xff] %vm2648_vm3, %v2635_v13  ;;  %v2630_v47 = vadd.f32 %v2713_v9, %v2629_v45  ;;  %v3451_v48 = vpop.f32.mrf.mxu0 }
0x1a76   :  { %v3457_v49 = vpop.f32.mrf.mxu1  ;;  %2649 = vst.msk [vmem:[%s4358_s9] sm:$0xff] %vm2648_vm3, %v2610_v46  ;;  %v2625_v50 = vadd.f32 %v3451_v48, %v2713_v9 }
0x1a77   :  { %2653 = vst.msk [vmem:[%s4358_s9 + $0x20] sm:$0xff] %vm2648_vm3, %v2630_v47  ;;  %v2645_v51 = vadd.f32 %v3457_v49, %v2713_v9  ;;  %v2619_v52 = vpop.f32.mrf.mxu0 }
0x1a78   :  { %v2639_v53 = vpop.f32.mrf.mxu1  ;;  %2652 = vst.msk [vmem:[%s4358_s9 + $0x18] sm:$0xff] %vm2648_vm3, %v2625_v50  ;;  %v2620_v54 = vadd.f32 %v2713_v9, %v2619_v52 }
0x1a79   :  { %2656 = vst.msk [vmem:[%s4358_s9 + $0x38] sm:$0xff] %vm2648_vm3, %v2645_v51  ;;  %v2640_v55 = vadd.f32 %v2713_v9, %v2639_v53 }
0x1a7a   :  { %2651 = vst.msk [vmem:[%s4358_s9 + $0x10] sm:$0xff] %vm2648_vm3, %v2620_v54 }
0x1a7b   :  { %2655 = vst.msk [vmem:[%s4358_s9 + $0x30] sm:$0xff] %vm2648_vm3, %v2640_v55 }
0x1a7c   :  { %2665 = vsyncpa [#allocation3], 1 }

</bundles_post_ra>
